<compile_context>
chip_gen: v5e
topology: v5e:2x2
jax: 0.10.0
libtpu: 0.0.40
codegen_flags: <defaults>
</compile_context>

<pallas_src>
import math

import jax
import jax.numpy as jnp
from jax.experimental import pallas as pl
from jax.experimental.pallas import tpu as pltpu


_VMEM = lambda: pl.BlockSpec(memory_space=pltpu.MemorySpace.VMEM)


def _derive_dims(cfg, batch):
    P = cfg["channel_p"]; C = cfg["channel_temp"]
    K = cfg["conv_pers_window"]; pw = cfg["pool_pers_window"]
    W = cfg["window"]; T = cfg["target_dim"]; Cin = cfg["input_channel"]
    assert K % 2 == 1
    W1 = W - K + 1            # after conv1
    Wp1 = W1 // pw            # after maxPool1
    Wp2 = Wp1 // pw           # after poolConcatenated
    W5 = Wp2 - K + 1          # after conv5
    fcd = W5 // pw            # after maxPool2 (== fc_dim)
    assert fcd >= 1, "window too small for this configuration"
    # slab width: largest lane index touched by any stage (incl. branch-conv
    # left/right reach at pooled stride), rounded up to a 128-lane multiple.
    need = max(W, (Wp1 + K - 1) * pw, (Wp2 + K - 1) * pw * pw)
    SLAB = 128 * ((need + 127) // 128)
    return dict(P=P, C=C, K=K, pw=pw, W=W, T=T, Cin=Cin, W1=W1, Wp1=Wp1,
                Wp2=Wp2, W5=W5, fcd=fcd, SLAB=SLAB, B=batch)


# ----------------------------------------------------------------------------- kernel
def _make_kernel(d):
    P, C, K, pw = d["P"], d["C"], d["K"], d["pw"]
    B, SLAB, fcd = d["B"], d["SLAB"], d["fcd"]
    N = B * SLAB
    nW = float(B * d["W"])
    nW1 = float(B * d["W1"])
    n1 = float(B * P * d["W1"])
    nP1 = float(B * d["Wp1"])
    nW5 = float(B * d["W5"])
    f32, bf16 = jnp.float32, jnp.bfloat16

    def shift(a, cols):
        # a'[:, j] = a[:, (j + cols) mod N]  (static shift; XLU lane rotate)
        s = (-cols) % N
        return a if s == 0 else pltpu.roll(a, s, 1)

    def elu(v):                               # F.elu, alpha = 1
        return jnp.where(v > 0, v, jnp.exp(jnp.minimum(v, 0.0)) - 1.0)

    def kernel(x_ref, m_ref, wp_ref, ws_ref, w1_ref, g_ref, w2_ref, wbr_ref,
               w5_ref, b5_ref, wfc_ref, o_ref):
        mW, mW1 = m_ref[0:1, :], m_ref[1:2, :]
        mP1, mW5 = m_ref[2:3, :], m_ref[3:4, :]

        def bdot(w, a):                       # bf16 MXU matmul, f32 accumulate
            return jnp.dot(w, a.astype(bf16), preferred_element_type=f32)

        def bn(a, mask, n, eps):
            # training-mode BN, one row per channel; masked two-pass stats.
            mean = jnp.sum(a * mask, axis=1, keepdims=True) * (1.0 / n)
            c = a - mean
            var = jnp.sum(mask * c * c, axis=1, keepdims=True) * (1.0 / n)
            return c * jax.lax.rsqrt(var + eps)

        def bn_group(a, mask, n, eps):
            # batchnorm1: channel c owns P consecutive rows; G broadcasts sums.
            g = g_ref[...]
            mean = jnp.sum(jnp.dot(g, a * mask, preferred_element_type=f32),
                           axis=1, keepdims=True) * (1.0 / n)
            c = a - mean
            var = jnp.sum(jnp.dot(g, mask * c * c, preferred_element_type=f32),
                          axis=1, keepdims=True) * (1.0 / n)
            return c * jax.lax.rsqrt(var + eps)

        def pool_max(a, stride):
            # MaxPool2d((1,pw), stride pw, floor); input at `stride` lanes apart,
            # valid outputs land at window-start columns (stride*pw apart).
            m = a
            for t in range(1, pw):
                m = jnp.maximum(m, shift(a, t * stride))
            return m

        # --- channelProj -> BN -> ELU ; shapeTrans -> BN -> ELU (1x1 convs) ---
        y = elu(bn(bdot(wp_ref[...], x_ref[...]), mW, nW, 1e-5))
        y = elu(bn(bdot(ws_ref[...], y), mW, nW, 1e-5))

        # --- torch.transpose(1,2) is a reinterpretation; conv1 (1,K) valid ----
        st1 = jnp.concatenate([shift(y, k) for k in range(K)], axis=0)
        h = jnp.dot(w1_ref[...], st1.astype(bf16), preferred_element_type=f32)
        h = elu(bn_group(h, mW1, n1, 0.0))              # batchnorm1 (eps=0)

        # --- conv2 (P,1) contracts the (c,p) rows; batchnorm2 (eps=0) ---------
        z = elu(bn(bdot(w2_ref[...], h), mW1, nW1, 0.0))

        # --- maxPool1: valid results at columns i*pw; mask to exact zeros so
        #     the padded/dilated branch convs read true zero padding -----------
        p1 = pool_max(z, 1) * mP1

        # --- dilated + 'same' branch convs fused into one matmul over the
        #     2K-1 pooled-index offsets; per-row BN == batchnormDil/batchnorm3 -
        stb = jnp.concatenate(
            [shift(p1, (j - (K - 1)) * pw) for j in range(2 * K - 1)], axis=0)
        br = jnp.dot(wbr_ref[...], stb.astype(bf16), preferred_element_type=f32)
        br = elu(bn(br, mP1, nP1, 1e-5))

        # --- concat -> batchnorm_cancat -> poolConcatenated (stride pw*pw) ----
        q = pool_max(bn(jnp.concatenate([p1, br], axis=0), mP1, nP1, 1e-5), pw)

        # --- conv5 (valid, with bias) -> batchnorm5 -> ELU ---------------------
        st5 = jnp.concatenate([shift(q, k * pw * pw) for k in range(K)], axis=0)
        z5 = jnp.dot(w5_ref[...], st5.astype(bf16),
                     preferred_element_type=f32) + b5_ref[...]
        z5 = elu(bn(z5, mW5, nW5, 1e-5))

        # --- maxPool2 -> flatten (torch .view order baked into wfc) -> fc -----
        z5p = pool_max(z5, pw * pw)
        stf = jnp.concatenate([shift(z5p, i * pw ** 3) for i in range(fcd)],
                              axis=0)
        # batch b's logits land at column b*SLAB; (T, B*SLAB) lane-dense store.
        o_ref[...] = jnp.dot(wfc_ref[...], stf.astype(bf16),
                             preferred_element_type=f32)

    return kernel


# ----------------------------------------------------------------------------- fused forward
def emg_net_forward(x, params, cfg):
    B, Cin, H, W = x.shape
    assert H == 1, "module implies input height 1"
    d = _derive_dims(cfg, B)
    SLAB = d["SLAB"]
    N = B * SLAB
    pw = d["pw"]
    f32 = jnp.float32

    # batch folded into lanes on 128-aligned zero-padded slabs
    x3 = jnp.transpose(x.reshape(B, Cin, W).astype(f32), (1, 0, 2))
    x2 = jnp.pad(x3, ((0, 0), (0, 0), (0, SLAB - W))).reshape(Cin, N)

    # per-stage validity masks (valid data lives at strided slab positions)
    col = jnp.arange(N) % SLAB
    mW = (col < d["W"]).astype(f32)
    mW1 = (col < d["W1"]).astype(f32)
    mP1 = ((col % pw == 0) & (col < d["Wp1"] * pw)).astype(f32)
    mW5 = ((col % (pw * pw) == 0) & (col < d["W5"] * pw * pw)).astype(f32)
    zero = jnp.zeros_like(mW)
    masks = jnp.stack([mW, mW1, mP1, mW5, zero, zero, zero, zero], axis=0)

    out_full = pl.pallas_call(
        _make_kernel(d),
        out_shape=jax.ShapeDtypeStruct((d["T"], N), f32),
        in_specs=[_VMEM() for _ in range(11)],
        out_specs=_VMEM(),
    )(x2, masks, params["wp"], params["ws"], params["w1big"], params["G"],
      params["w2f"], params["wbr"], params["w5f"], params["b5"], params["wfc"])

    return out_full[:, ::SLAB].T                       # (B, target_dim)


# ----------------------------------------------------------------------------- parameter init
def init_params(key, cfg, batch):
    d = _derive_dims(cfg, batch)
    P, C, K = d["P"], d["C"], d["K"]
    T, Cin, fcd = d["T"], d["Cin"], d["fcd"]
    f32, bf16 = jnp.float32, jnp.bfloat16

    ks = jax.random.split(key, 9)

    def conv_init(k, shape, kh, kw, cout):
        n = kh * kw * cout
        return math.sqrt(2.0 / n) * jax.random.normal(k, shape, f32)

    wp = conv_init(ks[0], (P, Cin), 1, 1, P)                 # channelProj
    ws = conv_init(ks[1], (P, P), 1, 1, P)                   # shapeTrans
    w1 = conv_init(ks[2], (C, K), 1, K, C)                   # conv1
    w2 = conv_init(ks[3], (C, C, P), P, 1, C)                # conv2
    w3 = conv_init(ks[4], (C, C, K), 1, K, C)                # conv3
    wd = conv_init(ks[5], (C, C, K), 1, K, C)                # dilatedconv
    w5 = conv_init(ks[6], (3 * C, 3 * C, K), 1, K, 3 * C)    # conv5
    b5_bound = 1.0 / math.sqrt(3 * C * K)
    b5 = jax.random.uniform(ks[7], (3 * C, 1), f32,
                            minval=-b5_bound, maxval=b5_bound)
    wfc = jax.random.normal(ks[8], (T, 3 * C * fcd), f32) / math.sqrt(3 * C * fcd)

    # grouped-BN (batchnorm1) block-diagonal group-sum matrix G = gexp @ gmat
    gmat = (jnp.arange(C)[:, None] ==
            (jnp.arange(C * P)[None, :] // P)).astype(f32)
    G = gmat.T @ gmat                                        # (C*P, C*P)

    # fused dilated/'same' branch weight over the 2K-1 pooled-index offsets
    wbr = jnp.zeros((2 * C, (2 * K - 1) * C), f32)
    for k in range(K):
        jd = 2 * k                      # dilation-2 offset 2k-(K-1) -> block 2k
        ju = k + (K - 1) // 2           # 'same' offset k-(K-1)//2
        wbr = wbr.at[0:C, jd * C:(jd + 1) * C].set(wd[:, :, k])
        wbr = wbr.at[C:2 * C, ju * C:(ju + 1) * C].set(w3[:, :, k])

    params = {
        "wp": wp.astype(bf16),
        "ws": ws.astype(bf16),
        # conv1 as one stacked matmul: rows (c,p) <- stacked rows (k,p)
        "w1big": jnp.kron(w1, jnp.eye(P, dtype=f32)).astype(bf16),
        "G": G,
        "w2f": w2.reshape(C, C * P).astype(bf16),
        "wbr": wbr.astype(bf16),
        "w5f": w5.transpose(0, 2, 1).reshape(3 * C, K * 3 * C).astype(bf16),
        "b5": b5,
        # fc reordered so flat index (i, c) matches the stacked maxPool2 rolls
        "wfc": wfc.reshape(T, 3 * C, fcd).transpose(0, 2, 1)
                  .reshape(T, fcd * 3 * C).astype(bf16),
    }
    return params, fcd


# ----------------------------------------------------------------------------- main
if __name__ == "__main__":
    # Small configuration consistent with the module's structure (default
    # window=100 with K=11 collapses to width 0 before conv5, so we shrink the
    # temporal/kernel sizes while keeping every stage of the forward pass).
    cfg = dict(channel_p=8, channel_temp=8, conv_pers_window=3,
               pool_pers_window=3, window=48, target_dim=8, input_channel=4)
    B = 2

    key = jax.random.PRNGKey(0)
    kx, kp = jax.random.split(key)
    params, fc_dim = init_params(kp, cfg, B)

    x = jax.random.normal(kx, (B, cfg["input_channel"], 1, cfg["window"]),
                          jnp.float32)

    out = jax.block_until_ready(emg_net_forward(x, params, cfg))
    assert out.shape == (B, cfg["target_dim"])
    assert bool(jnp.all(jnp.isfinite(out)))
    print("KERNEL_OK")
</pallas_src>

<mosaic_0001>
module attributes {stable_mosaic.version = 11 : i64} {
  func.func @kernel(%arg0: memref<4x256xf32, #tpu.memory_space<vmem>>, %arg1: memref<8x256xf32, #tpu.memory_space<vmem>>, %arg2: memref<8x4xbf16, #tpu.memory_space<vmem>>, %arg3: memref<8x8xbf16, #tpu.memory_space<vmem>>, %arg4: memref<64x24xbf16, #tpu.memory_space<vmem>>, %arg5: memref<64x64xf32, #tpu.memory_space<vmem>>, %arg6: memref<8x64xbf16, #tpu.memory_space<vmem>>, %arg7: memref<16x40xbf16, #tpu.memory_space<vmem>>, %arg8: memref<24x72xbf16, #tpu.memory_space<vmem>>, %arg9: memref<24x1xf32, #tpu.memory_space<vmem>>, %arg10: memref<8x24xbf16, #tpu.memory_space<vmem>>, %arg11: memref<8x256xf32, #tpu.memory_space<vmem>>) attributes {dimension_semantics = [], scalar_prefetch = 0 : i64, scratch_operands = 0 : i64, tpu.core_type = #tpu.core_type<tc>} {
    %c0 = arith.constant 0 : index
    %c0_0 = arith.constant 0 : index
    %0 = vector.load %arg1[%c0, %c0_0] : memref<8x256xf32, #tpu.memory_space<vmem>>, vector<1x256xf32>
    %c1 = arith.constant 1 : index
    %c0_1 = arith.constant 0 : index
    %1 = vector.load %arg1[%c1, %c0_1] : memref<8x256xf32, #tpu.memory_space<vmem>>, vector<1x256xf32>
    %c2 = arith.constant 2 : index
    %c0_2 = arith.constant 0 : index
    %2 = vector.load %arg1[%c2, %c0_2] : memref<8x256xf32, #tpu.memory_space<vmem>>, vector<1x256xf32>
    %c3 = arith.constant 3 : index
    %c0_3 = arith.constant 0 : index
    %3 = vector.load %arg1[%c3, %c0_3] : memref<8x256xf32, #tpu.memory_space<vmem>>, vector<1x256xf32>
    %c0_4 = arith.constant 0 : index
    %c0_5 = arith.constant 0 : index
    %4 = vector.load %arg2[%c0_4, %c0_5] : memref<8x4xbf16, #tpu.memory_space<vmem>>, vector<8x4xbf16>
    %c0_6 = arith.constant 0 : index
    %c0_7 = arith.constant 0 : index
    %5 = vector.load %arg0[%c0_6, %c0_7] : memref<4x256xf32, #tpu.memory_space<vmem>>, vector<4x256xf32>
    %6 = arith.truncf %5 : vector<4x256xf32> to vector<4x256xbf16>
    %cst = arith.constant dense<0.000000e+00> : vector<8x256xf32>
    %7 = tpu.matmul %4, %6, %cst {dimension_numbers = #tpu.dot_dimension_numbers<[1], [0], [0], [1], [0, 0, 1, 1], [], []>} : vector<8x4xbf16>, vector<4x256xbf16>, vector<8x256xf32> -> vector<8x256xf32>
    %8 = vector.broadcast %0 : vector<1x256xf32> to vector<8x256xf32>
    %9 = arith.mulf %7, %8 : vector<8x256xf32>
    %cst_8 = arith.constant dense<0.000000e+00> : vector<8xf32>
    %10 = vector.multi_reduction <add>, %9, %cst_8 [1] : vector<8x256xf32> to vector<8xf32>
    %11 = vector.shape_cast %10 : vector<8xf32> to vector<8x1xf32>
    %cst_9 = arith.constant 0.010416667 : f32
    %12 = vector.broadcast %cst_9 : f32 to vector<8x1xf32>
    %13 = arith.mulf %11, %12 : vector<8x1xf32>
    %14 = vector.broadcast %13 : vector<8x1xf32> to vector<8x256xf32>
    %15 = arith.subf %7, %14 : vector<8x256xf32>
    %16 = vector.broadcast %0 : vector<1x256xf32> to vector<8x256xf32>
    %17 = arith.mulf %16, %15 : vector<8x256xf32>
    %18 = arith.mulf %17, %15 : vector<8x256xf32>
    %cst_10 = arith.constant dense<0.000000e+00> : vector<8xf32>
    %19 = vector.multi_reduction <add>, %18, %cst_10 [1] : vector<8x256xf32> to vector<8xf32>
    %20 = vector.shape_cast %19 : vector<8xf32> to vector<8x1xf32>
    %cst_11 = arith.constant 0.010416667 : f32
    %21 = vector.broadcast %cst_11 : f32 to vector<8x1xf32>
    %22 = arith.mulf %20, %21 : vector<8x1xf32>
    %cst_12 = arith.constant 9.99999974E-6 : f32
    %23 = vector.broadcast %cst_12 : f32 to vector<8x1xf32>
    %24 = arith.addf %22, %23 : vector<8x1xf32>
    %25 = math.rsqrt %24 : vector<8x1xf32>
    %26 = vector.broadcast %25 : vector<8x1xf32> to vector<8x256xf32>
    %27 = arith.mulf %15, %26 : vector<8x256xf32>
    %cst_13 = arith.constant 0.000000e+00 : f32
    %28 = vector.broadcast %cst_13 : f32 to vector<8x256xf32>
    %29 = arith.cmpf ogt, %27, %28 : vector<8x256xf32>
    %cst_14 = arith.constant 0.000000e+00 : f32
    %30 = vector.broadcast %cst_14 : f32 to vector<8x256xf32>
    %31 = arith.minimumf %27, %30 : vector<8x256xf32>
    %32 = math.exp %31 : vector<8x256xf32>
    %cst_15 = arith.constant 1.000000e+00 : f32
    %33 = vector.broadcast %cst_15 : f32 to vector<8x256xf32>
    %34 = arith.subf %32, %33 : vector<8x256xf32>
    %35 = arith.select %29, %27, %34 : vector<8x256xi1>, vector<8x256xf32>
    %c0_16 = arith.constant 0 : index
    %c0_17 = arith.constant 0 : index
    %36 = vector.load %arg3[%c0_16, %c0_17] : memref<8x8xbf16, #tpu.memory_space<vmem>>, vector<8x8xbf16>
    %37 = arith.truncf %35 : vector<8x256xf32> to vector<8x256xbf16>
    %cst_18 = arith.constant dense<0.000000e+00> : vector<8x256xf32>
    %38 = tpu.matmul %36, %37, %cst_18 {dimension_numbers = #tpu.dot_dimension_numbers<[1], [0], [0], [1], [0, 0, 1, 1], [], []>} : vector<8x8xbf16>, vector<8x256xbf16>, vector<8x256xf32> -> vector<8x256xf32>
    %39 = vector.broadcast %0 : vector<1x256xf32> to vector<8x256xf32>
    %40 = arith.mulf %38, %39 : vector<8x256xf32>
    %cst_19 = arith.constant dense<0.000000e+00> : vector<8xf32>
    %41 = vector.multi_reduction <add>, %40, %cst_19 [1] : vector<8x256xf32> to vector<8xf32>
    %42 = vector.shape_cast %41 : vector<8xf32> to vector<8x1xf32>
    %cst_20 = arith.constant 0.010416667 : f32
    %43 = vector.broadcast %cst_20 : f32 to vector<8x1xf32>
    %44 = arith.mulf %42, %43 : vector<8x1xf32>
    %45 = vector.broadcast %44 : vector<8x1xf32> to vector<8x256xf32>
    %46 = arith.subf %38, %45 : vector<8x256xf32>
    %47 = vector.broadcast %0 : vector<1x256xf32> to vector<8x256xf32>
    %48 = arith.mulf %47, %46 : vector<8x256xf32>
    %49 = arith.mulf %48, %46 : vector<8x256xf32>
    %cst_21 = arith.constant dense<0.000000e+00> : vector<8xf32>
    %50 = vector.multi_reduction <add>, %49, %cst_21 [1] : vector<8x256xf32> to vector<8xf32>
    %51 = vector.shape_cast %50 : vector<8xf32> to vector<8x1xf32>
    %cst_22 = arith.constant 0.010416667 : f32
    %52 = vector.broadcast %cst_22 : f32 to vector<8x1xf32>
    %53 = arith.mulf %51, %52 : vector<8x1xf32>
    %cst_23 = arith.constant 9.99999974E-6 : f32
    %54 = vector.broadcast %cst_23 : f32 to vector<8x1xf32>
    %55 = arith.addf %53, %54 : vector<8x1xf32>
    %56 = math.rsqrt %55 : vector<8x1xf32>
    %57 = vector.broadcast %56 : vector<8x1xf32> to vector<8x256xf32>
    %58 = arith.mulf %46, %57 : vector<8x256xf32>
    %cst_24 = arith.constant 0.000000e+00 : f32
    %59 = vector.broadcast %cst_24 : f32 to vector<8x256xf32>
    %60 = arith.cmpf ogt, %58, %59 : vector<8x256xf32>
    %cst_25 = arith.constant 0.000000e+00 : f32
    %61 = vector.broadcast %cst_25 : f32 to vector<8x256xf32>
    %62 = arith.minimumf %58, %61 : vector<8x256xf32>
    %63 = math.exp %62 : vector<8x256xf32>
    %cst_26 = arith.constant 1.000000e+00 : f32
    %64 = vector.broadcast %cst_26 : f32 to vector<8x256xf32>
    %65 = arith.subf %63, %64 : vector<8x256xf32>
    %66 = arith.select %60, %58, %65 : vector<8x256xi1>, vector<8x256xf32>
    %c255_i32 = arith.constant 255 : i32
    %67 = tpu.dynamic_rotate %66 by %c255_i32 dim 1 : vector<8x256xf32>, i32 -> vector<8x256xf32>
    %c254_i32 = arith.constant 254 : i32
    %68 = tpu.dynamic_rotate %66 by %c254_i32 dim 1 : vector<8x256xf32>, i32 -> vector<8x256xf32>
    %69 = tpu.concatenate %66, %67, %68 in 0 : vector<8x256xf32>, vector<8x256xf32>, vector<8x256xf32> -> vector<24x256xf32>
    %c0_27 = arith.constant 0 : index
    %c0_28 = arith.constant 0 : index
    %70 = vector.load %arg4[%c0_27, %c0_28] : memref<64x24xbf16, #tpu.memory_space<vmem>>, vector<64x24xbf16>
    %71 = arith.truncf %69 : vector<24x256xf32> to vector<24x256xbf16>
    %cst_29 = arith.constant dense<0.000000e+00> : vector<64x256xf32>
    %72 = tpu.matmul %70, %71, %cst_29 {dimension_numbers = #tpu.dot_dimension_numbers<[1], [0], [0], [1], [0, 0, 1, 1], [], []>} : vector<64x24xbf16>, vector<24x256xbf16>, vector<64x256xf32> -> vector<64x256xf32>
    %c0_30 = arith.constant 0 : index
    %c0_31 = arith.constant 0 : index
    %73 = vector.load %arg5[%c0_30, %c0_31] : memref<64x64xf32, #tpu.memory_space<vmem>>, vector<64x64xf32>
    %74 = vector.broadcast %1 : vector<1x256xf32> to vector<64x256xf32>
    %75 = arith.mulf %72, %74 : vector<64x256xf32>
    %cst_32 = arith.constant dense<0.000000e+00> : vector<64x256xf32>
    %76 = tpu.matmul %73, %75, %cst_32 {dimension_numbers = #tpu.dot_dimension_numbers<[1], [0], [0], [1], [0, 0, 1, 1], [], []>} : vector<64x64xf32>, vector<64x256xf32>, vector<64x256xf32> -> vector<64x256xf32>
    %cst_33 = arith.constant dense<0.000000e+00> : vector<64xf32>
    %77 = vector.multi_reduction <add>, %76, %cst_33 [1] : vector<64x256xf32> to vector<64xf32>
    %78 = vector.shape_cast %77 : vector<64xf32> to vector<64x1xf32>
    %cst_34 = arith.constant 0.00135869568 : f32
    %79 = vector.broadcast %cst_34 : f32 to vector<64x1xf32>
    %80 = arith.mulf %78, %79 : vector<64x1xf32>
    %81 = vector.broadcast %80 : vector<64x1xf32> to vector<64x256xf32>
    %82 = arith.subf %72, %81 : vector<64x256xf32>
    %83 = vector.broadcast %1 : vector<1x256xf32> to vector<64x256xf32>
    %84 = arith.mulf %83, %82 : vector<64x256xf32>
    %85 = arith.mulf %84, %82 : vector<64x256xf32>
    %cst_35 = arith.constant dense<0.000000e+00> : vector<64x256xf32>
    %86 = tpu.matmul %73, %85, %cst_35 {dimension_numbers = #tpu.dot_dimension_numbers<[1], [0], [0], [1], [0, 0, 1, 1], [], []>} : vector<64x64xf32>, vector<64x256xf32>, vector<64x256xf32> -> vector<64x256xf32>
    %cst_36 = arith.constant dense<0.000000e+00> : vector<64xf32>
    %87 = vector.multi_reduction <add>, %86, %cst_36 [1] : vector<64x256xf32> to vector<64xf32>
    %88 = vector.shape_cast %87 : vector<64xf32> to vector<64x1xf32>
    %cst_37 = arith.constant 0.00135869568 : f32
    %89 = vector.broadcast %cst_37 : f32 to vector<64x1xf32>
    %90 = arith.mulf %88, %89 : vector<64x1xf32>
    %cst_38 = arith.constant 0.000000e+00 : f32
    %91 = vector.broadcast %cst_38 : f32 to vector<64x1xf32>
    %92 = arith.addf %90, %91 : vector<64x1xf32>
    %93 = math.rsqrt %92 : vector<64x1xf32>
    %94 = vector.broadcast %93 : vector<64x1xf32> to vector<64x256xf32>
    %95 = arith.mulf %82, %94 : vector<64x256xf32>
    %cst_39 = arith.constant 0.000000e+00 : f32
    %96 = vector.broadcast %cst_39 : f32 to vector<64x256xf32>
    %97 = arith.cmpf ogt, %95, %96 : vector<64x256xf32>
    %cst_40 = arith.constant 0.000000e+00 : f32
    %98 = vector.broadcast %cst_40 : f32 to vector<64x256xf32>
    %99 = arith.minimumf %95, %98 : vector<64x256xf32>
    %100 = math.exp %99 : vector<64x256xf32>
    %cst_41 = arith.constant 1.000000e+00 : f32
    %101 = vector.broadcast %cst_41 : f32 to vector<64x256xf32>
    %102 = arith.subf %100, %101 : vector<64x256xf32>
    %103 = arith.select %97, %95, %102 : vector<64x256xi1>, vector<64x256xf32>
    %c0_42 = arith.constant 0 : index
    %c0_43 = arith.constant 0 : index
    %104 = vector.load %arg6[%c0_42, %c0_43] : memref<8x64xbf16, #tpu.memory_space<vmem>>, vector<8x64xbf16>
    %105 = arith.truncf %103 : vector<64x256xf32> to vector<64x256xbf16>
    %cst_44 = arith.constant dense<0.000000e+00> : vector<8x256xf32>
    %106 = tpu.matmul %104, %105, %cst_44 {dimension_numbers = #tpu.dot_dimension_numbers<[1], [0], [0], [1], [0, 0, 1, 1], [], []>} : vector<8x64xbf16>, vector<64x256xbf16>, vector<8x256xf32> -> vector<8x256xf32>
    %107 = vector.broadcast %1 : vector<1x256xf32> to vector<8x256xf32>
    %108 = arith.mulf %106, %107 : vector<8x256xf32>
    %cst_45 = arith.constant dense<0.000000e+00> : vector<8xf32>
    %109 = vector.multi_reduction <add>, %108, %cst_45 [1] : vector<8x256xf32> to vector<8xf32>
    %110 = vector.shape_cast %109 : vector<8xf32> to vector<8x1xf32>
    %cst_46 = arith.constant 0.0108695654 : f32
    %111 = vector.broadcast %cst_46 : f32 to vector<8x1xf32>
    %112 = arith.mulf %110, %111 : vector<8x1xf32>
    %113 = vector.broadcast %112 : vector<8x1xf32> to vector<8x256xf32>
    %114 = arith.subf %106, %113 : vector<8x256xf32>
    %115 = vector.broadcast %1 : vector<1x256xf32> to vector<8x256xf32>
    %116 = arith.mulf %115, %114 : vector<8x256xf32>
    %117 = arith.mulf %116, %114 : vector<8x256xf32>
    %cst_47 = arith.constant dense<0.000000e+00> : vector<8xf32>
    %118 = vector.multi_reduction <add>, %117, %cst_47 [1] : vector<8x256xf32> to vector<8xf32>
    %119 = vector.shape_cast %118 : vector<8xf32> to vector<8x1xf32>
    %cst_48 = arith.constant 0.0108695654 : f32
    %120 = vector.broadcast %cst_48 : f32 to vector<8x1xf32>
    %121 = arith.mulf %119, %120 : vector<8x1xf32>
    %cst_49 = arith.constant 0.000000e+00 : f32
    %122 = vector.broadcast %cst_49 : f32 to vector<8x1xf32>
    %123 = arith.addf %121, %122 : vector<8x1xf32>
    %124 = math.rsqrt %123 : vector<8x1xf32>
    %125 = vector.broadcast %124 : vector<8x1xf32> to vector<8x256xf32>
    %126 = arith.mulf %114, %125 : vector<8x256xf32>
    %cst_50 = arith.constant 0.000000e+00 : f32
    %127 = vector.broadcast %cst_50 : f32 to vector<8x256xf32>
    %128 = arith.cmpf ogt, %126, %127 : vector<8x256xf32>
    %cst_51 = arith.constant 0.000000e+00 : f32
    %129 = vector.broadcast %cst_51 : f32 to vector<8x256xf32>
    %130 = arith.minimumf %126, %129 : vector<8x256xf32>
    %131 = math.exp %130 : vector<8x256xf32>
    %cst_52 = arith.constant 1.000000e+00 : f32
    %132 = vector.broadcast %cst_52 : f32 to vector<8x256xf32>
    %133 = arith.subf %131, %132 : vector<8x256xf32>
    %134 = arith.select %128, %126, %133 : vector<8x256xi1>, vector<8x256xf32>
    %c255_i32_53 = arith.constant 255 : i32
    %135 = tpu.dynamic_rotate %134 by %c255_i32_53 dim 1 : vector<8x256xf32>, i32 -> vector<8x256xf32>
    %136 = arith.maximumf %134, %135 : vector<8x256xf32>
    %c254_i32_54 = arith.constant 254 : i32
    %137 = tpu.dynamic_rotate %134 by %c254_i32_54 dim 1 : vector<8x256xf32>, i32 -> vector<8x256xf32>
    %138 = arith.maximumf %136, %137 : vector<8x256xf32>
    %139 = vector.broadcast %2 : vector<1x256xf32> to vector<8x256xf32>
    %140 = arith.mulf %138, %139 : vector<8x256xf32>
    %c6_i32 = arith.constant 6 : i32
    %141 = tpu.dynamic_rotate %140 by %c6_i32 dim 1 : vector<8x256xf32>, i32 -> vector<8x256xf32>
    %c3_i32 = arith.constant 3 : i32
    %142 = tpu.dynamic_rotate %140 by %c3_i32 dim 1 : vector<8x256xf32>, i32 -> vector<8x256xf32>
    %c253_i32 = arith.constant 253 : i32
    %143 = tpu.dynamic_rotate %140 by %c253_i32 dim 1 : vector<8x256xf32>, i32 -> vector<8x256xf32>
    %c250_i32 = arith.constant 250 : i32
    %144 = tpu.dynamic_rotate %140 by %c250_i32 dim 1 : vector<8x256xf32>, i32 -> vector<8x256xf32>
    %145 = tpu.concatenate %141, %142, %140, %143, %144 in 0 : vector<8x256xf32>, vector<8x256xf32>, vector<8x256xf32>, vector<8x256xf32>, vector<8x256xf32> -> vector<40x256xf32>
    %c0_55 = arith.constant 0 : index
    %c0_56 = arith.constant 0 : index
    %146 = vector.load %arg7[%c0_55, %c0_56] : memref<16x40xbf16, #tpu.memory_space<vmem>>, vector<16x40xbf16>
    %147 = arith.truncf %145 : vector<40x256xf32> to vector<40x256xbf16>
    %cst_57 = arith.constant dense<0.000000e+00> : vector<16x256xf32>
    %148 = tpu.matmul %146, %147, %cst_57 {dimension_numbers = #tpu.dot_dimension_numbers<[1], [0], [0], [1], [0, 0, 1, 1], [], []>} : vector<16x40xbf16>, vector<40x256xbf16>, vector<16x256xf32> -> vector<16x256xf32>
    %149 = vector.broadcast %2 : vector<1x256xf32> to vector<16x256xf32>
    %150 = arith.mulf %148, %149 : vector<16x256xf32>
    %cst_58 = arith.constant dense<0.000000e+00> : vector<16xf32>
    %151 = vector.multi_reduction <add>, %150, %cst_58 [1] : vector<16x256xf32> to vector<16xf32>
    %152 = vector.shape_cast %151 : vector<16xf32> to vector<16x1xf32>
    %cst_59 = arith.constant 0.0333333351 : f32
    %153 = vector.broadcast %cst_59 : f32 to vector<16x1xf32>
    %154 = arith.mulf %152, %153 : vector<16x1xf32>
    %155 = vector.broadcast %154 : vector<16x1xf32> to vector<16x256xf32>
    %156 = arith.subf %148, %155 : vector<16x256xf32>
    %157 = vector.broadcast %2 : vector<1x256xf32> to vector<16x256xf32>
    %158 = arith.mulf %157, %156 : vector<16x256xf32>
    %159 = arith.mulf %158, %156 : vector<16x256xf32>
    %cst_60 = arith.constant dense<0.000000e+00> : vector<16xf32>
    %160 = vector.multi_reduction <add>, %159, %cst_60 [1] : vector<16x256xf32> to vector<16xf32>
    %161 = vector.shape_cast %160 : vector<16xf32> to vector<16x1xf32>
    %cst_61 = arith.constant 0.0333333351 : f32
    %162 = vector.broadcast %cst_61 : f32 to vector<16x1xf32>
    %163 = arith.mulf %161, %162 : vector<16x1xf32>
    %cst_62 = arith.constant 9.99999974E-6 : f32
    %164 = vector.broadcast %cst_62 : f32 to vector<16x1xf32>
    %165 = arith.addf %163, %164 : vector<16x1xf32>
    %166 = math.rsqrt %165 : vector<16x1xf32>
    %167 = vector.broadcast %166 : vector<16x1xf32> to vector<16x256xf32>
    %168 = arith.mulf %156, %167 : vector<16x256xf32>
    %cst_63 = arith.constant 0.000000e+00 : f32
    %169 = vector.broadcast %cst_63 : f32 to vector<16x256xf32>
    %170 = arith.cmpf ogt, %168, %169 : vector<16x256xf32>
    %cst_64 = arith.constant 0.000000e+00 : f32
    %171 = vector.broadcast %cst_64 : f32 to vector<16x256xf32>
    %172 = arith.minimumf %168, %171 : vector<16x256xf32>
    %173 = math.exp %172 : vector<16x256xf32>
    %cst_65 = arith.constant 1.000000e+00 : f32
    %174 = vector.broadcast %cst_65 : f32 to vector<16x256xf32>
    %175 = arith.subf %173, %174 : vector<16x256xf32>
    %176 = arith.select %170, %168, %175 : vector<16x256xi1>, vector<16x256xf32>
    %177 = tpu.concatenate %140, %176 in 0 : vector<8x256xf32>, vector<16x256xf32> -> vector<24x256xf32>
    %178 = vector.broadcast %2 : vector<1x256xf32> to vector<24x256xf32>
    %179 = arith.mulf %177, %178 : vector<24x256xf32>
    %cst_66 = arith.constant dense<0.000000e+00> : vector<24xf32>
    %180 = vector.multi_reduction <add>, %179, %cst_66 [1] : vector<24x256xf32> to vector<24xf32>
    %181 = vector.shape_cast %180 : vector<24xf32> to vector<24x1xf32>
    %cst_67 = arith.constant 0.0333333351 : f32
    %182 = vector.broadcast %cst_67 : f32 to vector<24x1xf32>
    %183 = arith.mulf %181, %182 : vector<24x1xf32>
    %184 = vector.broadcast %183 : vector<24x1xf32> to vector<24x256xf32>
    %185 = arith.subf %177, %184 : vector<24x256xf32>
    %186 = vector.broadcast %2 : vector<1x256xf32> to vector<24x256xf32>
    %187 = arith.mulf %186, %185 : vector<24x256xf32>
    %188 = arith.mulf %187, %185 : vector<24x256xf32>
    %cst_68 = arith.constant dense<0.000000e+00> : vector<24xf32>
    %189 = vector.multi_reduction <add>, %188, %cst_68 [1] : vector<24x256xf32> to vector<24xf32>
    %190 = vector.shape_cast %189 : vector<24xf32> to vector<24x1xf32>
    %cst_69 = arith.constant 0.0333333351 : f32
    %191 = vector.broadcast %cst_69 : f32 to vector<24x1xf32>
    %192 = arith.mulf %190, %191 : vector<24x1xf32>
    %cst_70 = arith.constant 9.99999974E-6 : f32
    %193 = vector.broadcast %cst_70 : f32 to vector<24x1xf32>
    %194 = arith.addf %192, %193 : vector<24x1xf32>
    %195 = math.rsqrt %194 : vector<24x1xf32>
    %196 = vector.broadcast %195 : vector<24x1xf32> to vector<24x256xf32>
    %197 = arith.mulf %185, %196 : vector<24x256xf32>
    %c253_i32_71 = arith.constant 253 : i32
    %198 = tpu.dynamic_rotate %197 by %c253_i32_71 dim 1 : vector<24x256xf32>, i32 -> vector<24x256xf32>
    %199 = arith.maximumf %197, %198 : vector<24x256xf32>
    %c250_i32_72 = arith.constant 250 : i32
    %200 = tpu.dynamic_rotate %197 by %c250_i32_72 dim 1 : vector<24x256xf32>, i32 -> vector<24x256xf32>
    %201 = arith.maximumf %199, %200 : vector<24x256xf32>
    %c247_i32 = arith.constant 247 : i32
    %202 = tpu.dynamic_rotate %201 by %c247_i32 dim 1 : vector<24x256xf32>, i32 -> vector<24x256xf32>
    %c238_i32 = arith.constant 238 : i32
    %203 = tpu.dynamic_rotate %201 by %c238_i32 dim 1 : vector<24x256xf32>, i32 -> vector<24x256xf32>
    %204 = tpu.concatenate %201, %202, %203 in 0 : vector<24x256xf32>, vector<24x256xf32>, vector<24x256xf32> -> vector<72x256xf32>
    %c0_73 = arith.constant 0 : index
    %c0_74 = arith.constant 0 : index
    %205 = vector.load %arg8[%c0_73, %c0_74] : memref<24x72xbf16, #tpu.memory_space<vmem>>, vector<24x72xbf16>
    %206 = arith.truncf %204 : vector<72x256xf32> to vector<72x256xbf16>
    %cst_75 = arith.constant dense<0.000000e+00> : vector<24x256xf32>
    %207 = tpu.matmul %205, %206, %cst_75 {dimension_numbers = #tpu.dot_dimension_numbers<[1], [0], [0], [1], [0, 0, 1, 1], [], []>} : vector<24x72xbf16>, vector<72x256xbf16>, vector<24x256xf32> -> vector<24x256xf32>
    %c0_76 = arith.constant 0 : index
    %c0_77 = arith.constant 0 : index
    %208 = vector.load %arg9[%c0_76, %c0_77] : memref<24x1xf32, #tpu.memory_space<vmem>>, vector<24x1xf32>
    %209 = vector.broadcast %208 : vector<24x1xf32> to vector<24x256xf32>
    %210 = arith.addf %207, %209 : vector<24x256xf32>
    %211 = vector.broadcast %3 : vector<1x256xf32> to vector<24x256xf32>
    %212 = arith.mulf %210, %211 : vector<24x256xf32>
    %cst_78 = arith.constant dense<0.000000e+00> : vector<24xf32>
    %213 = vector.multi_reduction <add>, %212, %cst_78 [1] : vector<24x256xf32> to vector<24xf32>
    %214 = vector.shape_cast %213 : vector<24xf32> to vector<24x1xf32>
    %cst_79 = arith.constant 0.166666672 : f32
    %215 = vector.broadcast %cst_79 : f32 to vector<24x1xf32>
    %216 = arith.mulf %214, %215 : vector<24x1xf32>
    %217 = vector.broadcast %216 : vector<24x1xf32> to vector<24x256xf32>
    %218 = arith.subf %210, %217 : vector<24x256xf32>
    %219 = vector.broadcast %3 : vector<1x256xf32> to vector<24x256xf32>
    %220 = arith.mulf %219, %218 : vector<24x256xf32>
    %221 = arith.mulf %220, %218 : vector<24x256xf32>
    %cst_80 = arith.constant dense<0.000000e+00> : vector<24xf32>
    %222 = vector.multi_reduction <add>, %221, %cst_80 [1] : vector<24x256xf32> to vector<24xf32>
    %223 = vector.shape_cast %222 : vector<24xf32> to vector<24x1xf32>
    %cst_81 = arith.constant 0.166666672 : f32
    %224 = vector.broadcast %cst_81 : f32 to vector<24x1xf32>
    %225 = arith.mulf %223, %224 : vector<24x1xf32>
    %cst_82 = arith.constant 9.99999974E-6 : f32
    %226 = vector.broadcast %cst_82 : f32 to vector<24x1xf32>
    %227 = arith.addf %225, %226 : vector<24x1xf32>
    %228 = math.rsqrt %227 : vector<24x1xf32>
    %229 = vector.broadcast %228 : vector<24x1xf32> to vector<24x256xf32>
    %230 = arith.mulf %218, %229 : vector<24x256xf32>
    %cst_83 = arith.constant 0.000000e+00 : f32
    %231 = vector.broadcast %cst_83 : f32 to vector<24x256xf32>
    %232 = arith.cmpf ogt, %230, %231 : vector<24x256xf32>
    %cst_84 = arith.constant 0.000000e+00 : f32
    %233 = vector.broadcast %cst_84 : f32 to vector<24x256xf32>
    %234 = arith.minimumf %230, %233 : vector<24x256xf32>
    %235 = math.exp %234 : vector<24x256xf32>
    %cst_85 = arith.constant 1.000000e+00 : f32
    %236 = vector.broadcast %cst_85 : f32 to vector<24x256xf32>
    %237 = arith.subf %235, %236 : vector<24x256xf32>
    %238 = arith.select %232, %230, %237 : vector<24x256xi1>, vector<24x256xf32>
    %c247_i32_86 = arith.constant 247 : i32
    %239 = tpu.dynamic_rotate %238 by %c247_i32_86 dim 1 : vector<24x256xf32>, i32 -> vector<24x256xf32>
    %240 = arith.maximumf %238, %239 : vector<24x256xf32>
    %c238_i32_87 = arith.constant 238 : i32
    %241 = tpu.dynamic_rotate %238 by %c238_i32_87 dim 1 : vector<24x256xf32>, i32 -> vector<24x256xf32>
    %242 = arith.maximumf %240, %241 : vector<24x256xf32>
    %c0_88 = arith.constant 0 : index
    %c0_89 = arith.constant 0 : index
    %243 = vector.load %arg10[%c0_88, %c0_89] : memref<8x24xbf16, #tpu.memory_space<vmem>>, vector<8x24xbf16>
    %244 = arith.truncf %242 : vector<24x256xf32> to vector<24x256xbf16>
    %cst_90 = arith.constant dense<0.000000e+00> : vector<8x256xf32>
    %245 = tpu.matmul %243, %244, %cst_90 {dimension_numbers = #tpu.dot_dimension_numbers<[1], [0], [0], [1], [0, 0, 1, 1], [], []>} : vector<8x24xbf16>, vector<24x256xbf16>, vector<8x256xf32> -> vector<8x256xf32>
    %c0_91 = arith.constant 0 : index
    %c0_92 = arith.constant 0 : index
    %246 = vector.load %arg11[%c0_91, %c0_92] : memref<8x256xf32, #tpu.memory_space<vmem>>, vector<8x256xf32>
    tpu.vector_store %arg11[%c0_91, %c0_92], %245 {strides = array<i32>} : memref<8x256xf32, #tpu.memory_space<vmem>>, vector<8x256xf32>,
    return
  }
}

</mosaic_0001>

<bundles_post_ra>
// kernel: tpu_custom_call.1
= control target key start
LH: loop header
LB: loop body
LE: loop exit
PB: predicated region body
PF: predicated region fallthrough
CT: control target
= control target key end

     0   :  { %16 = vsyncpa [#allocation3], 0  ;;  %s2854_s0 = inlined_call_operand.vmem [shape: f32[4,256], index: 0, kind: input, shape index: {}]   ;;  %s2855_s1 = inlined_call_operand.vmem [shape: f32[8,256], index: 1, kind: input, shape index: {}]   ;;  %s2856_s2 = inlined_call_operand.vmem [shape: bf16[8,4], index: 2, kind: input, shape index: {}]   ;;  %s2857_s3 = inlined_call_operand.vmem [shape: bf16[8,8], index: 3, kind: input, shape index: {}]   ;;  %s2858_s4 = inlined_call_operand.vmem [shape: bf16[64,24], index: 4, kind: input, shape index: {}]   ;;  %s2859_s5 = inlined_call_operand.hbm [shape: f32[64,64], index: 5, kind: input, shape index: {}]   ;;  %s2860_s6 = inlined_call_operand.vmem [shape: bf16[8,64], index: 6, kind: input, shape index: {}]   ;;  %s2861_s7 = inlined_call_operand.vmem [shape: bf16[16,40], index: 7, kind: input, shape index: {}]   ;;  %s2862_s8 = inlined_call_operand.vmem [shape: bf16[24,72], index: 8, kind: input, shape index: {}]   ;;  %s2863_s9 = inlined_call_operand.vmem [shape: f32[24,1], index: 9, kind: input, shape index: {}]   ;;  %s2864_s10 = inlined_call_operand.vmem [shape: bf16[8,24], index: 10, kind: input, shape index: {}]   ;;  %s2865_s11 = inlined_call_operand.hbm [shape: f32[8,256], index: 11, kind: output, shape index: {}]  }
   0x1   :  { %17 = vsyncpa [#allocation4], 0  ;;  %s32_s19 = sshll.u32 %s2859_s5, 4  ;;  %s2060_s20 = smov [#allocation2]   ;;  %s33_s19 = int_to_ptr.hbm [resolvable:$true] %s32_s19 }
   0x2   :  { %s34_s21 = sshll.u32 %s2060_s20, 4  ;;  %s2061_s22 = smov 128   ;;  %s35_s21 = int_to_ptr.vmem [resolvable:$true] %s34_s21 }
   0x3   :  { %s2062_s23 = smov 8  }
   0x4   :  { %40 = dma.hbm_to_vmem [thread:$0]  %s33_s19, 1024, %s35_s21, [#allocation3], %s2061_s22, %s2061_s22, %s2062_s23  }
   0x5   :  { %2056 = dma.done.wait [#allocation3], 1024  }
   0x6   :  { %2057 = vsyncadd [#allocation3], 4294966272  ;;  %v64_v0 = vld [vmem:[%s2854_s0] sm:$0xff]  ;;  %vm77_vm0 = vcmask 1041408   ;;  %vm73_vm1 = vcmask 31744   ;;  %vm163_vm6 = vcmask 1043456  }
   0x7   :  { %66 = vst [vmem:[#allocation1] ss:$2 sm:$0xff] %v64_v0  ;;  %v63_v7 = vld [vmem:[%s2856_s2] sm:$0xf]  ;;  %vm159_vm8 = vcmask 64512   ;;  %s2064_s29 = smov 127  }
   0x8   :  { %v56_v8 = vld [vmem:[%s2855_s1] ss:$8 sm:$0x3]  ;;  %s2065_s23 = smov 6   ;;  %s2066_s24 = smov 125  }
   0x9   :  { %v2145_v9 = vperm.slane %v56_v8, 0  ;;  %v2147_v10 = vperm.slane %v56_v8, 1  ;;  %v156_v53 = vld [vmem:[%s2857_s3] sm:$0xf]  ;;  %s2063_s3 = smov 126   ;;  %s2067_s25 = smov 122  }
   0xa   :  { %s2068_s5 = smov 3   ;;  %s2070_s28 = smov 119  }
   0xb   :  { %s2072_s18 = smov [#allocation5]   ;;  %s1641_s21 = sshll.u32 %s2865_s11, 4  ;;  %s1642_s21 = int_to_ptr.hbm [resolvable:$true] %s1641_s21 }
   0xe   :  { %v67_v1 = vld.sshfl [vmem:[#allocation1] sm:$0xff pattern:$0x75316420]  ;;  %v68_v2 = vld.sshfl [vmem:[#allocation1 + $0x8] sm:$0xff pattern:$0x75316420] }
   0xf   :  { %v71_v3 = vpack.c.bf16 %v67_v1, %v67_v1  ;;  %v72_v4 = vpack.c.bf16 %v68_v2, %v68_v2 }
  0x11   :  { %v79_v5 = vsel %vm77_vm0, %v71_v3, 0  ;;  %v82_v6 = vsel %vm77_vm0, %v72_v4, 0  ;;  %vm285_vm0 = vcmask 195584  }
  0x12   :  { %91 = vmatpush.bf16.msra.mxu0 %v79_v5  ;;  %104 = vmatpush.bf16.msra.mxu1 %v82_v6 }
  0x15   :  { %1654 = vmatmul.msk.bf16.vlgmr.msra.gmra.mxu0 %vm73_vm1, %v63_v7  ;;  %1655 = vmatmul.msk.bf16.vlgmr.msra.gmra.mxu1 %vm73_vm1, %v63_v7  ;;  %vm391_vm1 = vcmask 523264  }
  0x92   :  { %v93_v11 = vpop.f32.mrf.mxu0  ;;  %v106_v12 = vpop.f32.mrf.mxu1 }
  0x93   :  { %v115_v13 = vmul.f32 %v2145_v9, %v93_v11  ;;  %v116_v14 = vmul.f32 %v2147_v10, %v106_v12 }
  0x95   :  { %v117_v15 = vadd.f32 %v116_v14, %v115_v13 }
  0x97   :  { %118 = vadd.xlane.f32.xlu0 %v117_v15 }
  0x9a   :  { %v95_v16 = vpop.f32.mrf.mxu0  ;;  %v108_v17 = vpop.f32.mrf.mxu1 }
 0x10a   :  { %v119_v18 = vpop.xlane.xlu0 %118 }
 0x10b   :  { %v120_v19 = vmul.f32 0.010416667, %v119_v18 }
 0x10d   :  { %v121_v20 = vsub.f32 %v93_v11, %v120_v19  ;;  %v122_v21 = vsub.f32 %v106_v12, %v120_v19 }
 0x10f   :  { %v123_v22 = vmul.f32 %v121_v20, %v2145_v9  ;;  %v124_v23 = vmul.f32 %v122_v21, %v2147_v10 }
 0x111   :  { %v125_v24 = vmul.f32 %v123_v22, %v121_v20  ;;  %v126_v25 = vmul.f32 %v124_v23, %v122_v21 }
 0x113   :  { %v127_v26 = vadd.f32 %v126_v25, %v125_v24 }
 0x115   :  { %128 = vadd.xlane.f32.xlu0 %v127_v26 }
 0x188   :  { %v129_v27 = vpop.xlane.xlu0 %128 }
 0x189   :  { %v130_v28 = vmul.f32 0.010416667, %v129_v27 }
 0x18b   :  { %v131_v29 = vadd.f32 1e-05, %v130_v28 }
 0x18d   :  { %1906 = vrsqrt.f32 %v131_v29  ;;  %vm138_vm3 = vweird.f32 %v131_v29 }
 0x193   :  { %v1907_v30 = vpop.eup %1906 }
 0x194   :  { %v133_v31 = vmul.f32 %v1907_v30, %v131_v29  ;;  %vm139_vm2 = vweird.f32 %v1907_v30  ;;  %v241_v29 = vlaneseq }
 0x195   :  { %vm140_vm4 = vmor %vm138_vm3, %vm139_vm2 }
 0x196   :  { %v134_v32 = vmul.f32 %v1907_v30, %v133_v31 }
 0x198   :  { %v135_v33 = vmul.f32 0.5, %v134_v32 }
 0x19a   :  { %v136_v34 = vsub.f32 1.5, %v135_v33 }
 0x19c   :  { %v137_v35 = vmul.f32 %v1907_v30, %v136_v34 }
 0x19e   :  { %v141_v36 = vsel %vm140_vm4, %v1907_v30, %v137_v35  ;;  %v2164_v30 = vand.u32 127, %v241_v29  ;;  %v2311_v29 = vld [vmem:[#allocation2 + $0x38] sm:$0xff] }
 0x19f   :  { %v142_v37 = vmul.f32 %v141_v36, %v121_v20  ;;  %v143_v38 = vmul.f32 %v141_v36, %v122_v21 }
 0x1a0   :  { %vm250_vm14 = vcmp.lt.s32.totalorder %v2164_v30, 126  ;;  %vm243_vm15 = vcmp.lt.s32.totalorder %v2164_v30, 127 }
 0x1a1   :  { %v146_v39 = vmin.f32 %v142_v37, 0.0  ;;  %v147_v40 = vmin.f32 %v143_v38, 0.0  ;;  %vm144_vm5 = vcmp.gt.f32.partialorder %v142_v37, 0.0  ;;  %vm145_vm7 = vcmp.gt.f32.partialorder %v143_v38, 0.0 }
 0x1a3   :  { %v148_v41 = vmul.f32 1.442695, %v146_v39  ;;  %v150_v42 = vmul.f32 1.442695, %v147_v40 }
 0x1a5   :  { %1908 = vpow2.f32 %v148_v41 }
 0x1a6   :  { %1910 = vpow2.f32 %v150_v42 }
 0x1ab   :  { %v1909_v43 = vpop.eup %1908 }
 0x1ac   :  { %v1911_v44 = vpop.eup %1910  ;;  %v1656_v45 = vadd.f32 -1.0, %v1909_v43 }
 0x1ad   :  { %v1657_v46 = vadd.f32 -1.0, %v1911_v44 }
 0x1ae   :  { %v154_v47 = vsel %vm144_vm5, %v142_v37, %v1656_v45 }
 0x1af   :  { %v157_v48 = vpack.c.bf16 %v154_v47, %v154_v47  ;;  %v155_v49 = vsel %vm145_vm7, %v143_v38, %v1657_v46  ;;  %v1764_v47 = vld [vmem:[%s2858_s4] sm:$0xff] }
 0x1b0   :  { %v158_v50 = vpack.c.bf16 %v155_v49, %v155_v49  ;;  %v1766_v49 = vld [vmem:[%s2858_s4 + $0x10] sm:$0xff] }
 0x1b1   :  { %v165_v51 = vsel %vm163_vm6, %v157_v48, 0  ;;  %v1765_v48 = vld [vmem:[%s2858_s4 + $0x8] sm:$0xff] }
 0x1b2   :  { %177 = vmatpush.bf16.msra.mxu2 %v165_v51  ;;  %v168_v52 = vsel %vm163_vm6, %v158_v50, 0  ;;  %v1767_v50 = vld [vmem:[%s2858_s4 + $0x18] sm:$0xff]  ;;  %s1639_s4 = sshll.u32 %s2072_s18, 4  ;;  %s1640_s4 = int_to_ptr.vmem [resolvable:$true] %s1639_s4 }
 0x1b3   :  { %190 = vmatpush.bf16.msra.mxu3 %v168_v52 }
 0x1b5   :  { %1658 = vmatmul.msk.bf16.vlgmr.msra.gmra.mxu2 %vm159_vm8, %v156_v53 }
 0x1b6   :  { %1659 = vmatmul.msk.bf16.vlgmr.msra.gmra.mxu3 %vm159_vm8, %v156_v53 }
 0x238   :  { %v179_v54 = vpop.f32.mrf.mxu2 }
 0x239   :  { %v196_v55 = vmul.f32 %v179_v54, %v2145_v9  ;;  %v192_v56 = vpop.f32.mrf.mxu3 }
 0x23a   :  { %v197_v57 = vmul.f32 %v192_v56, %v2147_v10 }
 0x23c   :  { %v198_v58 = vadd.f32 %v197_v57, %v196_v55 }
 0x23e   :  { %199 = vadd.xlane.f32.xlu1 %v198_v58 }
 0x240   :  { %v181_v59 = vpop.f32.mrf.mxu2 }
 0x241   :  { %v194_v60 = vpop.f32.mrf.mxu3 }
 0x2b1   :  { %v200_v61 = vpop.xlane.xlu1 %199 }
 0x2b2   :  { %v201_v62 = vmul.f32 0.010416667, %v200_v61 }
 0x2b4   :  { %v202_v63 = vsub.f32 %v179_v54, %v201_v62  ;;  %v203_v0 = vsub.f32 %v192_v56, %v201_v62 }
 0x2b6   :  { %v204_v1 = vmul.f32 %v202_v63, %v2145_v9  ;;  %v205_v2 = vmul.f32 %v203_v0, %v2147_v10 }
 0x2b8   :  { %v206_v3 = vmul.f32 %v204_v1, %v202_v63  ;;  %v207_v4 = vmul.f32 %v205_v2, %v203_v0  ;;  %v1651_v1 = vld [vmem:[%s2855_s1 + $0x1] ss:$8 sm:$0x3] }
 0x2b9   :  { %v2229_v2 = vperm.slane %v1651_v1, 0 }
 0x2ba   :  { %v208_v5 = vadd.f32 %v207_v4, %v206_v3  ;;  %v2231_v3 = vperm.slane %v1651_v1, 1 }
 0x2bc   :  { %209 = vadd.xlane.f32.xlu1 %v208_v5 }
 0x32f   :  { %v210_v6 = vpop.xlane.xlu1 %209 }
 0x330   :  { %v211_v7 = vmul.f32 0.010416667, %v210_v6 }
 0x332   :  { %v212_v8 = vadd.f32 1e-05, %v211_v7 }
 0x334   :  { %1912 = vrsqrt.f32 %v212_v8  ;;  %vm219_vm10 = vweird.f32 %v212_v8 }
 0x33a   :  { %v1913_v11 = vpop.eup %1912 }
 0x33b   :  { %v214_v12 = vmul.f32 %v1913_v11, %v212_v8  ;;  %vm220_vm9 = vweird.f32 %v1913_v11 }
 0x33c   :  { %vm221_vm11 = vmor %vm219_vm10, %vm220_vm9 }
 0x33d   :  { %v215_v13 = vmul.f32 %v1913_v11, %v214_v12 }
 0x33f   :  { %v216_v14 = vmul.f32 0.5, %v215_v13 }
 0x341   :  { %v217_v15 = vsub.f32 1.5, %v216_v14 }
 0x343   :  { %v218_v16 = vmul.f32 %v1913_v11, %v217_v15 }
 0x345   :  { %v222_v9 = vsel %vm221_vm11, %v1913_v11, %v218_v16 }
 0x346   :  { %v223_v17 = vmul.f32 %v222_v9, %v202_v63  ;;  %v224_v10 = vmul.f32 %v222_v9, %v203_v0 }
 0x348   :  { %v227_v18 = vmin.f32 %v223_v17, 0.0  ;;  %v228_v19 = vmin.f32 %v224_v10, 0.0  ;;  %vm225_vm12 = vcmp.gt.f32.partialorder %v223_v17, 0.0  ;;  %vm226_vm13 = vcmp.gt.f32.partialorder %v224_v10, 0.0 }
 0x34a   :  { %v229_v20 = vmul.f32 1.442695, %v227_v18  ;;  %v231_v21 = vmul.f32 1.442695, %v228_v19 }
 0x34c   :  { %1914 = vpow2.f32 %v229_v20 }
 0x34d   :  { %1916 = vpow2.f32 %v231_v21 }
 0x352   :  { %v1915_v22 = vpop.eup %1914 }
 0x353   :  { %v1917_v23 = vpop.eup %1916  ;;  %v1660_v24 = vadd.f32 -1.0, %v1915_v22  ;;  %v2269_v22 = vld [vmem:[#allocation2] sm:$0xff] }
 0x354   :  { %v1661_v25 = vadd.f32 -1.0, %v1917_v23  ;;  %v2275_v23 = vld [vmem:[#allocation2 + $0x8] sm:$0xff] }
 0x355   :  { %v235_v26 = vsel %vm225_vm12, %v223_v17, %v1660_v24  ;;  %v2281_v24 = vld [vmem:[#allocation2 + $0x10] sm:$0xff] }
 0x356   :  { %v236_v27 = vsel %vm226_vm13, %v224_v10, %v1661_v25  ;;  %v2287_v25 = vld [vmem:[#allocation2 + $0x18] sm:$0xff] }
 0x357   :  { %v1783_v28 = vpack.i.bf16 %v236_v27, %v235_v26 }
 0x359   :  { %1784 = vrot.lane.b32.xlu2 %v1783_v28, %s2063_s3 }
 0x361   :  { %1789 = vrot.lane.b32.xlu2 %v1783_v28, %s2064_s29  ;;  %v2305_v28 = vld [vmem:[#allocation2 + $0x30] sm:$0xff] }
 0x3b3   :  { %v1785_v31 = vpop.permute.xlu2 %1784 }
 0x3b4   :  { %v1787_v32 = vunpack.i.h.bf16 %v1785_v31  ;;  %v1786_v33 = vunpack.i.l.bf16 %v1785_v31 }
 0x3b6   :  { %v251_v34 = vsel %vm250_vm14, %v1786_v33, %v1787_v32  ;;  %v252_v35 = vsel %vm250_vm14, %v1787_v32, %v1786_v33 }
 0x3b7   :  { %v263_v36 = vpack.c.bf16 %v251_v34, %v251_v34  ;;  %v264_v37 = vpack.c.bf16 %v252_v35, %v252_v35 }
 0x3b9   :  { %v299_v38 = vsel %vm163_vm6, %v263_v36, 0  ;;  %v302_v39 = vsel %vm163_vm6, %v264_v37, 0 }
 0x3ba   :  { %310 = vmatpush.bf16.msrb.mxu0 %v299_v38  ;;  %339 = vmatpush.bf16.msrb.mxu1 %v302_v39 }
 0x3bb   :  { %v1790_v40 = vpop.permute.xlu2 %1789 }
 0x3bc   :  { %v1792_v41 = vunpack.i.h.bf16 %v1790_v40  ;;  %v1791_v42 = vunpack.i.l.bf16 %v1790_v40 }
 0x3be   :  { %v244_v43 = vsel %vm243_vm15, %v1791_v42, %v1792_v41  ;;  %v245_v44 = vsel %vm243_vm15, %v1792_v41, %v1791_v42 }
 0x3bf   :  { %v261_v45 = vpack.c.bf16 %v244_v43, %v235_v26  ;;  %v262_v46 = vpack.c.bf16 %v245_v44, %v236_v27  ;;  %v2293_v26 = vld [vmem:[#allocation2 + $0x20] sm:$0xff]  ;;  %v2299_v27 = vld [vmem:[#allocation2 + $0x28] sm:$0xff] }
 0x3c1   :  { %311 = vmatpush.bf16.msrb.mxu0 %v261_v45  ;;  %340 = vmatpush.bf16.msrb.mxu1 %v262_v46 }
 0x3c4   :  { %1678 = vmatmul.msk.bf16.vlgmr.msrb.gmra.mxu0 %vm285_vm0, %v1764_v47  ;;  %1682 = vmatmul.msk.bf16.vlgmr.msrb.gmra.mxu1 %vm285_vm0, %v1764_v47 }
 0x3d4   :  { %1679 = vmatmul.msk.bf16.gmra.mxu0 %vm285_vm0, %v1765_v48  ;;  %1683 = vmatmul.msk.bf16.gmra.mxu1 %vm285_vm0, %v1765_v48 }
 0x3e4   :  { %1680 = vmatmul.msk.bf16.gmra.mxu0 %vm285_vm0, %v1766_v49  ;;  %1684 = vmatmul.msk.bf16.gmra.mxu1 %vm285_vm0, %v1766_v49 }
 0x3f4   :  { %1681 = vmatmul.msk.bf16.gmra.mxu0 %vm285_vm0, %v1767_v50  ;;  %1685 = vmatmul.msk.bf16.gmra.mxu1 %vm285_vm0, %v1767_v50 }
 0x441   :  { %v2198_v51 = vpop.f32.mrf.mxu0  ;;  %v2200_v52 = vpop.f32.mrf.mxu1 }
 0x442   :  { %v375_v20 = vmul.f32 %v2229_v2, %v2198_v51  ;;  %v376_v21 = vmul.f32 %v2231_v3, %v2200_v52 }
 0x449   :  { %v2202_v53 = vpop.f32.mrf.mxu0  ;;  %v2204_v54 = vpop.f32.mrf.mxu1 }
 0x44a   :  { %v377_v18 = vmul.f32 %v2229_v2, %v2202_v53  ;;  %v378_v19 = vmul.f32 %v2231_v3, %v2204_v54 }
 0x451   :  { %v2206_v55 = vpop.f32.mrf.mxu0  ;;  %v2208_v56 = vpop.f32.mrf.mxu1 }
 0x452   :  { %v379_v17 = vmul.f32 %v2229_v2, %v2206_v55  ;;  %v380_v10 = vmul.f32 %v2231_v3, %v2208_v56 }
 0x459   :  { %v2210_v57 = vpop.f32.mrf.mxu0  ;;  %v2212_v58 = vpop.f32.mrf.mxu1 }
 0x45a   :  { %v381_v16 = vmul.f32 %v2229_v2, %v2210_v57  ;;  %v382_v9 = vmul.f32 %v2231_v3, %v2212_v58 }
 0x461   :  { %v2214_v59 = vpop.f32.mrf.mxu0  ;;  %v2216_v60 = vpop.f32.mrf.mxu1 }
 0x462   :  { %v383_v14 = vmul.f32 %v2229_v2, %v2214_v59  ;;  %v384_v15 = vmul.f32 %v2231_v3, %v2216_v60 }
 0x469   :  { %v2218_v61 = vpop.f32.mrf.mxu0  ;;  %v2220_v62 = vpop.f32.mrf.mxu1 }
 0x46a   :  { %v385_v12 = vmul.f32 %v2229_v2, %v2218_v61  ;;  %v386_v13 = vmul.f32 %v2231_v3, %v2220_v62 }
 0x471   :  { %v2222_v63 = vpop.f32.mrf.mxu0  ;;  %v2224_v0 = vpop.f32.mrf.mxu1 }
 0x472   :  { %v387_v8 = vmul.f32 %v2229_v2, %v2222_v63  ;;  %v388_v11 = vmul.f32 %v2231_v3, %v2224_v0 }
 0x479   :  { %v2233_v4 = vpop.f32.mrf.mxu0  ;;  %v2235_v5 = vpop.f32.mrf.mxu1 }
 0x47a   :  { %v389_v6 = vmul.f32 %v2229_v2, %v2233_v4  ;;  %v390_v7 = vmul.f32 %v2231_v3, %v2235_v5 }
 0x47c   :  { %424 = vmatpush.msrb.mxu2 %v389_v6  ;;  %465 = vmatpush.msrb.mxu3 %v390_v7 }
 0x47e   :  { %425 = vmatpush.msrb.mxu2 %v387_v8  ;;  %466 = vmatpush.msrb.mxu3 %v388_v11 }
 0x480   :  { %426 = vmatpush.msrb.mxu2 %v385_v12  ;;  %467 = vmatpush.msrb.mxu3 %v386_v13 }
 0x482   :  { %427 = vmatpush.msrb.mxu2 %v383_v14  ;;  %468 = vmatpush.msrb.mxu3 %v384_v15 }
 0x484   :  { %428 = vmatpush.msrb.mxu2 %v381_v16  ;;  %469 = vmatpush.msrb.mxu3 %v382_v9 }
 0x486   :  { %429 = vmatpush.msrb.mxu2 %v379_v17  ;;  %470 = vmatpush.msrb.mxu3 %v380_v10 }
 0x488   :  { %430 = vmatpush.msrb.mxu2 %v377_v18  ;;  %471 = vmatpush.msrb.mxu3 %v378_v19 }
 0x48a   :  { %431 = vmatpush.msrb.mxu2 %v375_v20  ;;  %472 = vmatpush.msrb.mxu3 %v376_v21 }
 0x48b   :  { %1686 = vmatmul.msk.f32.vlgmr.msrb.gmra.mxu2 %vm391_vm1, %v2269_v22  ;;  %1694 = vmatmul.msk.f32.vlgmr.msrb.gmra.mxu3 %vm391_vm1, %v2269_v22 }
 0x493   :  { %1687 = vmatmul.msk.f32.gmra.mxu2 %vm391_vm1, %v2275_v23  ;;  %1695 = vmatmul.msk.f32.gmra.mxu3 %vm391_vm1, %v2275_v23 }
 0x49b   :  { %1688 = vmatmul.msk.f32.gmra.mxu2 %vm391_vm1, %v2281_v24  ;;  %1696 = vmatmul.msk.f32.gmra.mxu3 %vm391_vm1, %v2281_v24 }
 0x4a3   :  { %1689 = vmatmul.msk.f32.gmra.mxu2 %vm391_vm1, %v2287_v25  ;;  %1697 = vmatmul.msk.f32.gmra.mxu3 %vm391_vm1, %v2287_v25 }
 0x4ab   :  { %1690 = vmatmul.msk.f32.gmra.mxu2 %vm391_vm1, %v2293_v26  ;;  %1698 = vmatmul.msk.f32.gmra.mxu3 %vm391_vm1, %v2293_v26 }
 0x4b3   :  { %1691 = vmatmul.msk.f32.gmra.mxu2 %vm391_vm1, %v2299_v27  ;;  %1699 = vmatmul.msk.f32.gmra.mxu3 %vm391_vm1, %v2299_v27 }
 0x4bb   :  { %1692 = vmatmul.msk.f32.gmra.mxu2 %vm391_vm1, %v2305_v28  ;;  %1700 = vmatmul.msk.f32.gmra.mxu3 %vm391_vm1, %v2305_v28 }
 0x4c3   :  { %1693 = vmatmul.msk.f32.gmra.mxu2 %vm391_vm1, %v2311_v29  ;;  %1701 = vmatmul.msk.f32.gmra.mxu3 %vm391_vm1, %v2311_v29 }
 0x50e   :  { %v433_v31 = vpop.f32.mrf.mxu2  ;;  %v474_v32 = vpop.f32.mrf.mxu3 }
 0x50f   :  { %v498_v33 = vadd.f32 %v474_v32, %v433_v31 }
 0x516   :  { %v436_v34 = vpop.f32.mrf.mxu2  ;;  %v477_v35 = vpop.f32.mrf.mxu3 }
 0x517   :  { %v501_v7 = vadd.f32 %v477_v35, %v436_v34 }
 0x51e   :  { %v439_v36 = vpop.f32.mrf.mxu2  ;;  %v480_v37 = vpop.f32.mrf.mxu3 }
 0x51f   :  { %v504_v8 = vadd.f32 %v480_v37, %v439_v36 }
 0x526   :  { %v442_v38 = vpop.f32.mrf.mxu2  ;;  %v483_v39 = vpop.f32.mrf.mxu3 }
 0x527   :  { %v507_v1 = vadd.f32 %v483_v39, %v442_v38 }
 0x52e   :  { %v445_v40 = vpop.f32.mrf.mxu2  ;;  %v486_v41 = vpop.f32.mrf.mxu3 }
 0x52f   :  { %v510_v42 = vadd.f32 %v486_v41, %v445_v40 }
 0x531   :  { %511 = vadd.xlane.f32.xlu0 %v510_v42 }
 0x536   :  { %v448_v43 = vpop.f32.mrf.mxu2  ;;  %v489_v44 = vpop.f32.mrf.mxu3 }
 0x537   :  { %v513_v45 = vadd.f32 %v489_v44, %v448_v43 }
 0x539   :  { %514 = vadd.xlane.f32.xlu2 %v513_v45 }
 0x53e   :  { %v451_v46 = vpop.f32.mrf.mxu2  ;;  %v492_v47 = vpop.f32.mrf.mxu3 }
 0x53f   :  { %v516_v48 = vadd.f32 %v492_v47, %v451_v46 }
 0x541   :  { %517 = vadd.xlane.f32.xlu1 %v516_v48 }
 0x546   :  { %v454_v49 = vpop.f32.mrf.mxu2  ;;  %v495_v50 = vpop.f32.mrf.mxu3 }
 0x547   :  { %v519_v6 = vadd.f32 %v495_v50, %v454_v49 }
 0x549   :  { %508 = vadd.xlane.f32.xlu1 %v507_v1  ;;  %520 = vadd.xlane.f32.xlu0 %v519_v6 }
 0x551   :  { %502 = vadd.xlane.f32.xlu1 %v501_v7  ;;  %505 = vadd.xlane.f32.xlu0 %v504_v8 }
 0x559   :  { %499 = vadd.xlane.f32.xlu0 %v498_v33 }
 0x5a4   :  { %v512_v11 = vpop.xlane.xlu0 %511 }
 0x5a5   :  { %v526_v17 = vmul.f32 0.0013586957, %v512_v11 }
 0x5ac   :  { %v515_v13 = vpop.xlane.xlu2 %514 }
 0x5ad   :  { %v527_v15 = vmul.f32 0.0013586957, %v515_v13 }
 0x5af   :  { %v2321_v19 = vsub.f32 %v2218_v61, %v527_v15  ;;  %v2333_v33 = vsub.f32 %v2220_v62, %v527_v15 }
 0x5b1   :  { %v556_v62 = vmul.f32 %v2321_v19, %v2229_v2 }
 0x5b3   :  { %v572_v44 = vmul.f32 %v556_v62, %v2321_v19 }
 0x5b4   :  { %v518_v12 = vpop.xlane.xlu1 %517 }
 0x5b5   :  { %v528_v14 = vmul.f32 0.0013586957, %v518_v12 }
 0x5b7   :  { %v2318_v10 = vsub.f32 %v2222_v63, %v528_v14  ;;  %v2324_v20 = vsub.f32 %v2224_v0, %v528_v14  ;;  %v2336_v63 = vsub.f32 %v2214_v59, %v526_v17 }
 0x5b9   :  { %v558_v34 = vmul.f32 %v2318_v10, %v2229_v2 }
 0x5bb   :  { %v574_v42 = vmul.f32 %v558_v34, %v2318_v10 }
 0x5bc   :  { %v509_v16 = vpop.xlane.xlu1 %508  ;;  %v521_v9 = vpop.xlane.xlu0 %520 }
 0x5bd   :  { %v529_v18 = vmul.f32 0.0013586957, %v521_v9  ;;  %v525_v21 = vmul.f32 0.0013586957, %v509_v16 }
 0x5bf   :  { %v2327_v31 = vsub.f32 %v2233_v4, %v529_v18  ;;  %v2330_v32 = vsub.f32 %v2235_v5, %v529_v18  ;;  %v2345_v4 = vsub.f32 %v2216_v60, %v526_v17  ;;  %v559_v5 = vmul.f32 %v2324_v20, %v2231_v3 }
 0x5c0   :  { %v2352_v59 = vsub.f32 %v2210_v57, %v525_v21  ;;  %v2357_v37 = vsub.f32 %v2212_v58, %v525_v21  ;;  %v557_v60 = vmul.f32 %v2333_v33, %v2231_v3  ;;  %v554_v57 = vmul.f32 %v2336_v63, %v2229_v2 }
 0x5c1   :  { %v560_v61 = vmul.f32 %v2327_v31, %v2229_v2  ;;  %v561_v0 = vmul.f32 %v2330_v32, %v2231_v3  ;;  %v575_v43 = vmul.f32 %v559_v5, %v2324_v20  ;;  %v555_v58 = vmul.f32 %v2345_v4, %v2231_v3 }
 0x5c2   :  { %v552_v48 = vmul.f32 %v2352_v59, %v2229_v2  ;;  %v573_v50 = vmul.f32 %v557_v60, %v2333_v33 }
 0x5c3   :  { %v576_v35 = vmul.f32 %v560_v61, %v2327_v31  ;;  %v577_v36 = vmul.f32 %v561_v0, %v2330_v32  ;;  %v571_v1 = vmul.f32 %v555_v58, %v2345_v4 }
 0x5c4   :  { %v503_v38 = vpop.xlane.xlu1 %502  ;;  %v506_v39 = vpop.xlane.xlu0 %505 }
 0x5c5   :  { %v523_v40 = vmul.f32 0.0013586957, %v503_v38  ;;  %v524_v41 = vmul.f32 0.0013586957, %v506_v39  ;;  %586 = vmatpush.msra.mxu0 %v576_v35  ;;  %627 = vmatpush.msra.mxu1 %v577_v36 }
 0x5c7   :  { %v2369_v45 = vsub.f32 %v2202_v53, %v523_v40  ;;  %v2372_v46 = vsub.f32 %v2206_v55, %v524_v41  ;;  %v2375_v47 = vsub.f32 %v2208_v56, %v524_v41  ;;  %587 = vmatpush.msra.mxu0 %v574_v42  ;;  %v2380_v49 = vsub.f32 %v2204_v54, %v523_v40 }
 0x5c8   :  { %628 = vmatpush.msra.mxu1 %v575_v43  ;;  %v553_v53 = vmul.f32 %v2357_v37, %v2231_v3  ;;  %v570_v55 = vmul.f32 %v554_v57, %v2336_v63  ;;  %v568_v54 = vmul.f32 %v552_v48, %v2352_v59 }
 0x5c9   :  { %588 = vmatpush.msra.mxu0 %v572_v44  ;;  %v550_v56 = vmul.f32 %v2372_v46, %v2229_v2  ;;  %v551_v6 = vmul.f32 %v2375_v47, %v2231_v3  ;;  %v548_v7 = vmul.f32 %v2369_v45, %v2229_v2  ;;  %v549_v12 = vmul.f32 %v2380_v49, %v2231_v3 }
 0x5ca   :  { %629 = vmatpush.msra.mxu1 %v573_v50  ;;  %v569_v11 = vmul.f32 %v553_v53, %v2357_v37 }
 0x5cb   :  { %589 = vmatpush.msra.mxu0 %v570_v55  ;;  %v566_v14 = vmul.f32 %v550_v56, %v2372_v46  ;;  %v567_v15 = vmul.f32 %v551_v6, %v2375_v47  ;;  %v564_v17 = vmul.f32 %v548_v7, %v2369_v45  ;;  %v565_v18 = vmul.f32 %v549_v12, %v2380_v49 }
 0x5cc   :  { %630 = vmatpush.msra.mxu1 %v571_v1  ;;  %v500_v8 = vpop.xlane.xlu0 %499 }
 0x5cd   :  { %v522_v13 = vmul.f32 0.0013586957, %v500_v8  ;;  %590 = vmatpush.msra.mxu0 %v568_v54 }
 0x5ce   :  { %631 = vmatpush.msra.mxu1 %v569_v11 }
 0x5cf   :  { %v2400_v16 = vsub.f32 %v2198_v51, %v522_v13  ;;  %v2403_v9 = vsub.f32 %v2200_v52, %v522_v13  ;;  %591 = vmatpush.msra.mxu0 %v566_v14 }
 0x5d0   :  { %632 = vmatpush.msra.mxu1 %v567_v15 }
 0x5d1   :  { %592 = vmatpush.msra.mxu0 %v564_v17  ;;  %v546_v21 = vmul.f32 %v2400_v16, %v2229_v2  ;;  %v547_v61 = vmul.f32 %v2403_v9, %v2231_v3 }
 0x5d2   :  { %633 = vmatpush.msra.mxu1 %v565_v18 }
 0x5d3   :  { %v562_v51 = vmul.f32 %v546_v21, %v2400_v16  ;;  %v563_v0 = vmul.f32 %v547_v61, %v2403_v9 }
 0x5d5   :  { %593 = vmatpush.msra.mxu0 %v562_v51  ;;  %634 = vmatpush.msra.mxu1 %v563_v0 }
 0x5d6   :  { %1702 = vmatmul.msk.f32.vlgmr.msra.gmra.mxu0 %vm391_vm1, %v2269_v22  ;;  %1710 = vmatmul.msk.f32.vlgmr.msra.gmra.mxu1 %vm391_vm1, %v2269_v22 }
 0x5de   :  { %1703 = vmatmul.msk.f32.gmra.mxu0 %vm391_vm1, %v2275_v23  ;;  %1711 = vmatmul.msk.f32.gmra.mxu1 %vm391_vm1, %v2275_v23 }
 0x5e6   :  { %1704 = vmatmul.msk.f32.gmra.mxu0 %vm391_vm1, %v2281_v24  ;;  %1712 = vmatmul.msk.f32.gmra.mxu1 %vm391_vm1, %v2281_v24 }
 0x5ee   :  { %1705 = vmatmul.msk.f32.gmra.mxu0 %vm391_vm1, %v2287_v25  ;;  %1713 = vmatmul.msk.f32.gmra.mxu1 %vm391_vm1, %v2287_v25 }
 0x5f6   :  { %1706 = vmatmul.msk.f32.gmra.mxu0 %vm391_vm1, %v2293_v26  ;;  %1714 = vmatmul.msk.f32.gmra.mxu1 %vm391_vm1, %v2293_v26 }
 0x5fe   :  { %1707 = vmatmul.msk.f32.gmra.mxu0 %vm391_vm1, %v2299_v27  ;;  %1715 = vmatmul.msk.f32.gmra.mxu1 %vm391_vm1, %v2299_v27 }
 0x606   :  { %1708 = vmatmul.msk.f32.gmra.mxu0 %vm391_vm1, %v2305_v28  ;;  %1716 = vmatmul.msk.f32.gmra.mxu1 %vm391_vm1, %v2305_v28 }
 0x60e   :  { %1709 = vmatmul.msk.f32.gmra.mxu0 %vm391_vm1, %v2311_v29  ;;  %1717 = vmatmul.msk.f32.gmra.mxu1 %vm391_vm1, %v2311_v29 }
 0x653   :  { %v595_v52 = vpop.f32.mrf.mxu0  ;;  %v636_v22 = vpop.f32.mrf.mxu1 }
 0x654   :  { %v660_v23 = vadd.f32 %v636_v22, %v595_v52 }
 0x65b   :  { %v598_v24 = vpop.f32.mrf.mxu0  ;;  %v639_v25 = vpop.f32.mrf.mxu1 }
 0x65c   :  { %v663_v44 = vadd.f32 %v639_v25, %v598_v24 }
 0x663   :  { %v601_v26 = vpop.f32.mrf.mxu0  ;;  %v642_v34 = vpop.f32.mrf.mxu1 }
 0x664   :  { %v666_v57 = vadd.f32 %v642_v34, %v601_v26 }
 0x66b   :  { %v604_v27 = vpop.f32.mrf.mxu0  ;;  %v645_v5 = vpop.f32.mrf.mxu1 }
 0x66c   :  { %v669_v62 = vadd.f32 %v645_v5, %v604_v27 }
 0x66e   :  { %670 = vadd.xlane.f32.xlu2 %v669_v62 }
 0x673   :  { %v607_v35 = vpop.f32.mrf.mxu0  ;;  %v648_v36 = vpop.f32.mrf.mxu1 }
 0x674   :  { %v672_v28 = vadd.f32 %v648_v36, %v607_v35 }
 0x676   :  { %673 = vadd.xlane.f32.xlu1 %v672_v28 }
 0x67b   :  { %v610_v38 = vpop.f32.mrf.mxu0  ;;  %v651_v39 = vpop.f32.mrf.mxu1 }
 0x67c   :  { %v675_v58 = vadd.f32 %v651_v39, %v610_v38 }
 0x683   :  { %v613_v60 = vpop.f32.mrf.mxu0  ;;  %v654_v40 = vpop.f32.mrf.mxu1 }
 0x684   :  { %v678_v29 = vadd.f32 %v654_v40, %v613_v60 }
 0x686   :  { %679 = vadd.xlane.f32.xlu1 %v678_v29 }
 0x68b   :  { %v616_v41 = vpop.f32.mrf.mxu0  ;;  %v657_v42 = vpop.f32.mrf.mxu1 }
 0x68c   :  { %v681_v43 = vadd.f32 %v657_v42, %v616_v41 }
 0x68e   :  { %667 = vadd.xlane.f32.xlu1 %v666_v57  ;;  %682 = vadd.xlane.f32.xlu0 %v681_v43 }
 0x696   :  { %664 = vadd.xlane.f32.xlu1 %v663_v44  ;;  %676 = vadd.xlane.f32.xlu0 %v675_v58 }
 0x69e   :  { %661 = vadd.xlane.f32.xlu0 %v660_v23 }
 0x6e1   :  { %v671_v48 = vpop.xlane.xlu2 %670 }
 0x6e2   :  { %v687_v50 = vmul.f32 0.0013586957, %v671_v48 }
 0x6e4   :  { %1918 = vrsqrt.f32 %v687_v50  ;;  %vm736_vm3 = vweird.f32 %v687_v50 }
 0x6e9   :  { %v674_v53 = vpop.xlane.xlu1 %673 }
 0x6ea   :  { %v1919_v55 = vpop.eup %1918  ;;  %v688_v56 = vmul.f32 0.0013586957, %v674_v53 }
 0x6eb   :  { %v731_v1 = vmul.f32 %v1919_v55, %v687_v50  ;;  %vm737_vm2 = vweird.f32 %v1919_v55 }
 0x6ec   :  { %1920 = vrsqrt.f32 %v688_v56  ;;  %vm738_vm4 = vmor %vm736_vm3, %vm737_vm2  ;;  %vm746_vm7 = vweird.f32 %v688_v56 }
 0x6ed   :  { %v732_v6 = vmul.f32 %v1919_v55, %v731_v1 }
 0x6ef   :  { %v733_v8 = vmul.f32 0.5, %v732_v6 }
 0x6f1   :  { %v734_v12 = vsub.f32 1.5, %v733_v8 }
 0x6f2   :  { %v1921_v54 = vpop.eup %1920 }
 0x6f3   :  { %v741_v7 = vmul.f32 %v1921_v54, %v688_v56  ;;  %v735_v17 = vmul.f32 %v1919_v55, %v734_v12  ;;  %vm747_vm5 = vweird.f32 %v1921_v54 }
 0x6f4   :  { %vm748_vm8 = vmor %vm746_vm7, %vm747_vm5 }
 0x6f5   :  { %v742_v11 = vmul.f32 %v1921_v54, %v741_v7  ;;  %v739_v21 = vsel %vm738_vm4, %v1919_v55, %v735_v17 }
 0x6f6   :  { %v2448_v24 = vmul.f32 %v739_v21, %v2352_v59  ;;  %v2451_v26 = vmul.f32 %v739_v21, %v2357_v37 }
 0x6f7   :  { %v743_v13 = vmul.f32 0.5, %v742_v11 }
 0x6f8   :  { %v818_v62 = vmin.f32 %v2448_v24, 0.0  ;;  %v819_v59 = vmin.f32 %v2451_v26, 0.0 }
 0x6f9   :  { %v680_v14 = vpop.xlane.xlu1 %679  ;;  %v744_v18 = vsub.f32 1.5, %v743_v13 }
 0x6fa   :  { %v690_v15 = vmul.f32 0.0013586957, %v680_v14  ;;  %v842_v43 = vmul.f32 1.442695, %v819_v59 }
 0x6fb   :  { %v745_v61 = vmul.f32 %v1921_v54, %v744_v18 }
 0x6fc   :  { %1922 = vrsqrt.f32 %v690_v15  ;;  %vm766_vm10 = vweird.f32 %v690_v15 }
 0x6fd   :  { %v749_v34 = vsel %vm748_vm8, %v1921_v54, %v745_v61 }
 0x6fe   :  { %v2456_v35 = vmul.f32 %v749_v34, %v2336_v63  ;;  %v2460_v36 = vmul.f32 %v749_v34, %v2345_v4  ;;  %v840_v63 = vmul.f32 1.442695, %v818_v62 }
 0x700   :  { %v820_v4 = vmin.f32 %v2456_v35, 0.0  ;;  %v821_v48 = vmin.f32 %v2460_v36, 0.0 }
 0x701   :  { %v668_v51 = vpop.xlane.xlu1 %667  ;;  %v683_v0 = vpop.xlane.xlu0 %682 }
 0x702   :  { %v1923_v52 = vpop.eup %1922  ;;  %v686_v22 = vmul.f32 0.0013586957, %v668_v51  ;;  %v2445_v23 = vmul.f32 0.0013586957, %v683_v0  ;;  %v844_v54 = vmul.f32 1.442695, %v820_v4 }
 0x703   :  { %v761_v25 = vmul.f32 %v1923_v52, %v690_v15  ;;  %vm767_vm9 = vweird.f32 %v1923_v52  ;;  %v846_v11 = vmul.f32 1.442695, %v821_v48 }
 0x704   :  { %1924 = vrsqrt.f32 %v686_v22  ;;  %vm768_vm11 = vmor %vm766_vm10, %vm767_vm9  ;;  %vm726_vm13 = vweird.f32 %v686_v22  ;;  %vm776_vm3 = vweird.f32 %v2445_v23 }
 0x705   :  { %v762_v27 = vmul.f32 %v1923_v52, %v761_v25  ;;  %1926 = vrsqrt.f32 %v2445_v23 }
 0x707   :  { %v763_v5 = vmul.f32 0.5, %v762_v27 }
 0x709   :  { %v764_v28 = vsub.f32 1.5, %v763_v5  ;;  %v665_v37 = vpop.xlane.xlu1 %664  ;;  %v677_v38 = vpop.xlane.xlu0 %676 }
 0x70a   :  { %v1925_v39 = vpop.eup %1924  ;;  %v2462_v60 = vmul.f32 0.0013586957, %v665_v37  ;;  %v2464_v40 = vmul.f32 0.0013586957, %v677_v38 }
 0x70b   :  { %v1927_v29 = vpop.eup %1926  ;;  %v765_v41 = vmul.f32 %v1923_v52, %v764_v28  ;;  %v721_v42 = vmul.f32 %v1925_v39, %v686_v22  ;;  %vm727_vm12 = vweird.f32 %v1925_v39 }
 0x70c   :  { %v771_v57 = vmul.f32 %v1927_v29, %v2445_v23  ;;  %1928 = vrsqrt.f32 %v2462_v60  ;;  %vm777_vm2 = vweird.f32 %v1927_v29  ;;  %vm728_vm4 = vmor %vm726_vm13, %vm727_vm12  ;;  %vm716_vm9 = vweird.f32 %v2462_v60 }
 0x70d   :  { %v769_v44 = vsel %vm768_vm11, %v1923_v52, %v765_v41  ;;  %v722_v58 = vmul.f32 %v1925_v39, %v721_v42  ;;  %1930 = vrsqrt.f32 %v2464_v40  ;;  %vm778_vm5 = vmor %vm776_vm3, %vm777_vm2  ;;  %vm756_vm11 = vweird.f32 %v2464_v40 }
 0x70e   :  { %v2472_v50 = vmul.f32 %v769_v44, %v2318_v10  ;;  %v2475_v53 = vmul.f32 %v769_v44, %v2324_v20  ;;  %v772_v55 = vmul.f32 %v1927_v29, %v771_v57  ;;  %1932 = vpow2.f32 %v840_v63 }
 0x70f   :  { %v723_v56 = vmul.f32 0.5, %v722_v58  ;;  %1934 = vpow2.f32 %v842_v43 }
 0x710   :  { %v824_v1 = vmin.f32 %v2472_v50, 0.0  ;;  %v773_v6 = vmul.f32 0.5, %v772_v55  ;;  %v825_v13 = vmin.f32 %v2475_v53, 0.0  ;;  %1936 = vpow2.f32 %v844_v54 }
 0x711   :  { %v724_v7 = vsub.f32 1.5, %v723_v56  ;;  %v662_v8 = vpop.xlane.xlu0 %661  ;;  %vm808_vm13 = vcmp.gt.f32.partialorder %v2472_v50, 0.0  ;;  %vm809_vm2 = vcmp.gt.f32.partialorder %v2475_v53, 0.0 }
 0x712   :  { %v1929_v12 = vpop.eup %1928  ;;  %v774_v10 = vsub.f32 1.5, %v773_v6  ;;  %v2481_v17 = vmul.f32 0.0013586957, %v662_v8  ;;  %v852_v18 = vmul.f32 1.442695, %v824_v1 }
 0x713   :  { %v1931_v20 = vpop.eup %1930  ;;  %v725_v14 = vmul.f32 %v1925_v39, %v724_v7  ;;  %v711_v15 = vmul.f32 %v1929_v12, %v2462_v60  ;;  %v854_v22 = vmul.f32 1.442695, %v825_v13  ;;  %vm717_vm7 = vweird.f32 %v1929_v12 }
 0x714   :  { %v775_v21 = vmul.f32 %v1927_v29, %v774_v10  ;;  %v751_v61 = vmul.f32 %v1931_v20, %v2464_v40  ;;  %1938 = vrsqrt.f32 %v2481_v17  ;;  %v2486_v52 = vpop.eup %1932  ;;  %vm757_vm8 = vweird.f32 %v1931_v20  ;;  %vm718_vm10 = vmor %vm716_vm9, %vm717_vm7 }
 0x715   :  { %v729_v51 = vsel %vm728_vm4, %v1925_v39, %v725_v14  ;;  %v712_v0 = vmul.f32 %v1929_v12, %v711_v15  ;;  %v2491_v27 = vpop.eup %1934  ;;  %1940 = vpow2.f32 %v846_v11  ;;  %vm758_vm12 = vmor %vm756_vm11, %vm757_vm8  ;;  %vm706_vm3 = vweird.f32 %v2481_v17 }
 0x716   :  { %v2489_v23 = vmul.f32 %v729_v51, %v2372_v46  ;;  %v779_v25 = vsel %vm778_vm5, %v1927_v29, %v775_v21  ;;  %v752_v34 = vmul.f32 %v1931_v20, %v751_v61  ;;  %v2500_v28 = vmul.f32 %v729_v51, %v2375_v47  ;;  %v2504_v29 = vpop.eup %1936 }
 0x717   :  { %v2494_v5 = vmul.f32 %v779_v25, %v2327_v31  ;;  %v2497_v62 = vmul.f32 %v779_v25, %v2330_v32  ;;  %v713_v59 = vmul.f32 0.5, %v712_v0  ;;  %1942 = vpow2.f32 %v852_v18 }
 0x718   :  { %v753_v37 = vmul.f32 0.5, %v752_v34  ;;  %1944 = vpow2.f32 %v854_v22  ;;  %v816_v32 = vmin.f32 %v2489_v23, 0.0  ;;  %v817_v43 = vmin.f32 %v2500_v28, 0.0 }
 0x719   :  { %v826_v46 = vmin.f32 %v2494_v5, 0.0  ;;  %v827_v38 = vmin.f32 %v2497_v62, 0.0  ;;  %v714_v39 = vsub.f32 1.5, %v713_v59  ;;  %vm810_vm5 = vcmp.gt.f32.partialorder %v2494_v5, 0.0 }
 0x71a   :  { %v754_v31 = vsub.f32 1.5, %v753_v37  ;;  %v1939_v41 = vpop.eup %1938  ;;  %v836_v1 = vmul.f32 1.442695, %v816_v32  ;;  %vm811_vm8 = vcmp.gt.f32.partialorder %v2497_v62, 0.0  ;;  %vm804_vm9 = vcmp.gt.f32.partialorder %v2456_v35, 0.0 }
 0x71b   :  { %v856_v42 = vmul.f32 1.442695, %v826_v46  ;;  %v858_v63 = vmul.f32 1.442695, %v827_v38  ;;  %v715_v47 = vmul.f32 %v1929_v12, %v714_v39  ;;  %v701_v4 = vmul.f32 %v1939_v41, %v2481_v17  ;;  %v2511_v44 = vpop.eup %1940 }
 0x71c   :  { %v755_v57 = vmul.f32 %v1931_v20, %v754_v31  ;;  %vm707_vm4 = vweird.f32 %v1939_v41 }
 0x71d   :  { %v719_v58 = vsel %vm718_vm10, %v1929_v12, %v715_v47  ;;  %1946 = vpow2.f32 %v856_v42  ;;  %v1943_v48 = vpop.eup %1942  ;;  %v702_v60 = vmul.f32 %v1939_v41, %v701_v4  ;;  %vm708_vm7 = vmor %vm706_vm3, %vm707_vm4  ;;  %vm805_vm10 = vcmp.gt.f32.partialorder %v2460_v36, 0.0 }
 0x71e   :  { %v2515_v55 = vmul.f32 %v719_v58, %v2369_v45  ;;  %v759_v56 = vsel %vm758_vm12, %v1931_v20, %v755_v57  ;;  %v2518_v6 = vmul.f32 %v719_v58, %v2380_v49  ;;  %1948 = vpow2.f32 %v858_v63  ;;  %v1945_v7 = vpop.eup %1944 }
 0x71f   :  { %v2521_v40 = vmul.f32 %v759_v56, %v2321_v19  ;;  %v2524_v54 = vmul.f32 %v759_v56, %v2333_v33  ;;  %v703_v8 = vmul.f32 0.5, %v702_v60  ;;  %v838_v45 = vmul.f32 1.442695, %v817_v43 }
 0x720   :  { %v1730_v11 = vadd.f32 -1.0, %v1943_v48  ;;  %v814_v12 = vmin.f32 %v2515_v55, 0.0  ;;  %v1731_v10 = vadd.f32 -1.0, %v1945_v7  ;;  %1950 = vpow2.f32 %v836_v1 }
 0x721   :  { %v822_v49 = vmin.f32 %v2521_v40, 0.0  ;;  %v704_v19 = vsub.f32 1.5, %v703_v8  ;;  %v823_v33 = vmin.f32 %v2524_v54, 0.0  ;;  %v815_v14 = vmin.f32 %v2518_v6, 0.0 }
 0x722   :  { %1952 = vpow2.f32 %v838_v45  ;;  %v888_v51 = vsel %vm808_vm13, %v2472_v50, %v1730_v11  ;;  %v832_v0 = vmul.f32 1.442695, %v814_v12  ;;  %v889_v50 = vsel %vm809_vm2, %v2475_v53, %v1731_v10 }
 0x723   :  { %v1947_v13 = vpop.eup %1946  ;;  %v848_v20 = vmul.f32 1.442695, %v822_v49  ;;  %v705_v15 = vmul.f32 %v1939_v41, %v704_v19  ;;  %v850_v21 = vmul.f32 1.442695, %v823_v33  ;;  %v834_v22 = vmul.f32 1.442695, %v815_v14 }
 0x724   :  { %v1732_v18 = vadd.f32 -1.0, %v1947_v13  ;;  %v1949_v61 = vpop.eup %1948  ;;  %v1727_v53 = vadd.f32 -1.0, %v2511_v44  ;;  %v1725_v4 = vadd.f32 -1.0, %v2491_v27  ;;  %vm806_vm11 = vcmp.gt.f32.partialorder %v2521_v40, 0.0  ;;  %v892_v14 = vld [vmem:[%s2860_s6] sm:$0xf] }
 0x725   :  { %1954 = vpow2.f32 %v848_v20  ;;  %v709_v25 = vsel %vm708_vm7, %v1939_v41, %v705_v15  ;;  %v1733_v59 = vadd.f32 -1.0, %v1949_v61  ;;  %vm807_vm12 = vcmp.gt.f32.partialorder %v2524_v54, 0.0 }
 0x726   :  { %v890_v34 = vsel %vm810_vm5, %v2494_v5, %v1732_v18  ;;  %1956 = vpow2.f32 %v850_v21  ;;  %v2543_v37 = vmul.f32 %v709_v25, %v2400_v16  ;;  %v2546_v17 = vmul.f32 %v709_v25, %v2403_v9  ;;  %v1951_v39 = vpop.eup %1950 }
 0x727   :  { %v899_v46 = vpack.c.bf16 %v890_v34, %v888_v51  ;;  %v891_v38 = vsel %vm811_vm8, %v2497_v62, %v1733_v59  ;;  %1958 = vpow2.f32 %v832_v0  ;;  %v1726_v9 = vadd.f32 -1.0, %v2504_v29 }
 0x728   :  { %v900_v5 = vpack.c.bf16 %v891_v38, %v889_v50  ;;  %v812_v31 = vmin.f32 %v2543_v37, 0.0  ;;  %v1953_v16 = vpop.eup %1952  ;;  %v813_v32 = vmin.f32 %v2546_v17, 0.0  ;;  %1960 = vpow2.f32 %v834_v22 }
 0x729   :  { %908 = vmatpush.bf16.msra.mxu2 %v899_v46  ;;  %v1724_v62 = vadd.f32 -1.0, %v2486_v52  ;;  %v1722_v57 = vadd.f32 -1.0, %v1951_v39  ;;  %v1723_v58 = vadd.f32 -1.0, %v1953_v16  ;;  %v884_v48 = vsel %vm804_vm9, %v2456_v35, %v1726_v9 }
 0x72a   :  { %921 = vmatpush.bf16.msra.mxu3 %v900_v5  ;;  %v828_v42 = vmul.f32 1.442695, %v812_v31  ;;  %v830_v43 = vmul.f32 1.442695, %v813_v32  ;;  %v885_v27 = vsel %vm805_vm10, %v2460_v36, %v1727_v53  ;;  %vm800_vm13 = vcmp.gt.f32.partialorder %v2489_v23, 0.0 }
 0x72b   :  { %v1955_v41 = vpop.eup %1954  ;;  %v880_v8 = vsel %vm800_vm13, %v2489_v23, %v1722_v57  ;;  %vm801_vm2 = vcmp.gt.f32.partialorder %v2500_v28, 0.0  ;;  %vm802_vm3 = vcmp.gt.f32.partialorder %v2448_v24, 0.0  ;;  %vm803_vm4 = vcmp.gt.f32.partialorder %v2451_v26, 0.0 }
 0x72c   :  { %v1957_v63 = vpop.eup %1956  ;;  %v1728_v47 = vadd.f32 -1.0, %v1955_v41  ;;  %1962 = vpow2.f32 %v828_v42  ;;  %v881_v35 = vsel %vm801_vm2, %v2500_v28, %v1723_v58  ;;  %v883_v11 = vsel %vm803_vm4, %v2451_v26, %v1725_v4 }
 0x72d   :  { %v1729_v29 = vadd.f32 -1.0, %v1957_v63  ;;  %1964 = vpow2.f32 %v830_v43  ;;  %v1959_v52 = vpop.eup %1958  ;;  %v896_v23 = vpack.c.bf16 %v883_v11, %v881_v35  ;;  %vm796_vm5 = vcmp.gt.f32.partialorder %v2543_v37, 0.0 }
 0x72e   :  { %v886_v44 = vsel %vm806_vm11, %v2521_v40, %v1728_v47  ;;  %v1961_v1 = vpop.eup %1960  ;;  %v882_v40 = vsel %vm802_vm3, %v2448_v24, %v1724_v62  ;;  %v1720_v36 = vadd.f32 -1.0, %v1959_v52  ;;  %vm798_vm7 = vcmp.gt.f32.partialorder %v2515_v55, 0.0 }
 0x72f   :  { %v897_v56 = vpack.c.bf16 %v886_v44, %v884_v48  ;;  %v887_v60 = vsel %vm807_vm12, %v2524_v54, %v1729_v29  ;;  %v895_v45 = vpack.c.bf16 %v882_v40, %v880_v8  ;;  %v1721_v49 = vadd.f32 -1.0, %v1961_v1 }
 0x730   :  { %v898_v7 = vpack.c.bf16 %v887_v60, %v885_v27  ;;  %v878_v33 = vsel %vm798_vm7, %v2515_v55, %v1720_v36  ;;  %vm797_vm8 = vcmp.gt.f32.partialorder %v2546_v17, 0.0  ;;  %vm799_vm9 = vcmp.gt.f32.partialorder %v2518_v6, 0.0  ;;  %v1652_v60 = vld [vmem:[%s2855_s1 + $0x2] ss:$8 sm:$0x3] }
 0x731   :  { %909 = vmatpush.bf16.msra.mxu2 %v897_v56  ;;  %v879_v10 = vsel %vm799_vm9, %v2518_v6, %v1721_v49  ;;  %v2607_v35 = vperm.slane %v1652_v60, 0  ;;  %v2609_v40 = vperm.slane %v1652_v60, 1  ;;  %vm998_vm2 = vcmp.lt.s32.totalorder %v2164_v30, 6 }
 0x732   :  { %922 = vmatpush.bf16.msra.mxu3 %v898_v7  ;;  %v1963_v54 = vpop.eup %1962  ;;  %vm1005_vm3 = vcmp.lt.s32.totalorder %v2164_v30, 3  ;;  %vm1035_vm4 = vcmask 326656  }
 0x733   :  { %v1965_v12 = vpop.eup %1964  ;;  %v1718_v19 = vadd.f32 -1.0, %v1963_v54 }
 0x734   :  { %v1719_v28 = vadd.f32 -1.0, %v1965_v12 }
 0x735   :  { %910 = vmatpush.bf16.msra.mxu2 %v895_v45  ;;  %v876_v24 = vsel %vm796_vm5, %v2543_v37, %v1718_v19 }
 0x736   :  { %923 = vmatpush.bf16.msra.mxu3 %v896_v23  ;;  %v893_v26 = vpack.c.bf16 %v878_v33, %v876_v24  ;;  %v877_v13 = vsel %vm797_vm8, %v2546_v17, %v1719_v28 }
 0x737   :  { %v894_v20 = vpack.c.bf16 %v879_v10, %v877_v13 }
 0x739   :  { %911 = vmatpush.bf16.msra.mxu2 %v893_v26 }
 0x73a   :  { %924 = vmatpush.bf16.msra.mxu3 %v894_v20 }
 0x73c   :  { %1734 = vmatmul.msk.bf16.vlgmr.msra.gmra.mxu2 %vm391_vm1, %v892_v14 }
 0x73d   :  { %1735 = vmatmul.msk.bf16.vlgmr.msra.gmra.mxu3 %vm391_vm1, %v892_v14 }
 0x7bf   :  { %v913_v55 = vpop.f32.mrf.mxu2 }
 0x7c0   :  { %v930_v15 = vmul.f32 %v913_v55, %v2229_v2  ;;  %v926_v18 = vpop.f32.mrf.mxu3 }
 0x7c1   :  { %v931_v21 = vmul.f32 %v926_v18, %v2231_v3 }
 0x7c3   :  { %v932_v61 = vadd.f32 %v931_v21, %v930_v15 }
 0x7c5   :  { %933 = vadd.xlane.f32.xlu2 %v932_v61 }
 0x7c7   :  { %v915_v6 = vpop.f32.mrf.mxu2 }
 0x7c8   :  { %v928_v51 = vpop.f32.mrf.mxu3 }
 0x838   :  { %v934_v0 = vpop.xlane.xlu2 %933 }
 0x839   :  { %v935_v22 = vmul.f32 0.010869565, %v934_v0 }
 0x83b   :  { %v936_v25 = vsub.f32 %v913_v55, %v935_v22  ;;  %v937_v34 = vsub.f32 %v926_v18, %v935_v22 }
 0x83d   :  { %v938_v59 = vmul.f32 %v936_v25, %v2229_v2  ;;  %v939_v37 = vmul.f32 %v937_v34, %v2231_v3 }
 0x83f   :  { %v940_v17 = vmul.f32 %v938_v59, %v936_v25  ;;  %v941_v46 = vmul.f32 %v939_v37, %v937_v34 }
 0x841   :  { %v942_v50 = vadd.f32 %v941_v46, %v940_v17 }
 0x843   :  { %943 = vadd.xlane.f32.xlu0 %v942_v50 }
 0x8b6   :  { %v944_v38 = vpop.xlane.xlu0 %943 }
 0x8b7   :  { %v945_v39 = vmul.f32 0.010869565, %v944_v38 }
 0x8b9   :  { %1966 = vrsqrt.f32 %v945_v39  ;;  %vm953_vm10 = vweird.f32 %v945_v39 }
 0x8bf   :  { %v1967_v5 = vpop.eup %1966 }
 0x8c0   :  { %v948_v31 = vmul.f32 %v1967_v5, %v945_v39  ;;  %vm954_vm1 = vweird.f32 %v1967_v5 }
 0x8c1   :  { %vm955_vm11 = vmor %vm953_vm10, %vm954_vm1 }
 0x8c2   :  { %v949_v16 = vmul.f32 %v1967_v5, %v948_v31 }
 0x8c4   :  { %v950_v9 = vmul.f32 0.5, %v949_v16  ;;  %v1768_v16 = vld [vmem:[%s2861_s7] sm:$0xff]  ;;  %s2069_s7 = smov 110  }
 0x8c6   :  { %v951_v32 = vsub.f32 1.5, %v950_v9 }
 0x8c8   :  { %v952_v41 = vmul.f32 %v1967_v5, %v951_v32 }
 0x8ca   :  { %v956_v53 = vsel %vm955_vm11, %v1967_v5, %v952_v41 }
 0x8cb   :  { %v958_v2 = vmul.f32 %v956_v53, %v937_v34  ;;  %v957_v62 = vmul.f32 %v956_v53, %v936_v25 }
 0x8cd   :  { %v962_v3 = vmin.f32 %v958_v2, 0.0  ;;  %v961_v42 = vmin.f32 %v957_v62, 0.0  ;;  %vm960_vm12 = vcmp.gt.f32.partialorder %v958_v2, 0.0  ;;  %vm959_vm13 = vcmp.gt.f32.partialorder %v957_v62, 0.0 }
 0x8cf   :  { %v965_v63 = vmul.f32 1.442695, %v962_v3  ;;  %v963_v47 = vmul.f32 1.442695, %v961_v42 }
 0x8d1   :  { %1968 = vpow2.f32 %v965_v63 }
 0x8d2   :  { %1970 = vpow2.f32 %v963_v47 }
 0x8d7   :  { %v1969_v57 = vpop.eup %1968 }
 0x8d8   :  { %v1971_v4 = vpop.eup %1970  ;;  %v1737_v43 = vadd.f32 -1.0, %v1969_v57 }
 0x8d9   :  { %v1736_v29 = vadd.f32 -1.0, %v1971_v4 }
 0x8da   :  { %v970_v58 = vsel %vm960_vm12, %v958_v2, %v1737_v43 }
 0x8db   :  { %973 = vrot.lane.b32.xlu2 %v970_v58, %s2064_s29  ;;  %v969_v48 = vsel %vm959_vm13, %v957_v62, %v1736_v29 }
 0x8dc   :  { %979 = vrot.lane.b32.xlu0 %v969_v48, %s2063_s3  ;;  %971 = vrot.lane.b32.xlu1 %v969_v48, %s2064_s29 }
 0x8e4   :  { %981 = vrot.lane.b32.xlu1 %v970_v58, %s2063_s3 }
 0x935   :  { %v974_v52 = vpop.permute.xlu2 %973 }
 0x94e   :  { %v972_v44 = vpop.permute.xlu1 %971  ;;  %v980_v1 = vpop.permute.xlu0 %979 }
 0x94f   :  { %v975_v56 = vsel %vm243_vm15, %v972_v44, %v974_v52  ;;  %v976_v27 = vsel %vm243_vm15, %v974_v52, %v972_v44  ;;  %vm1012_vm15 = vcmp.lt.s32.totalorder %v2164_v30, 125 }
 0x950   :  { %v977_v7 = vmax.f32 %v969_v48, %v975_v56  ;;  %v978_v8 = vmax.f32 %v970_v58, %v976_v27 }
 0x956   :  { %v982_v36 = vpop.permute.xlu1 %981 }
 0x957   :  { %v983_v54 = vsel %vm250_vm14, %v980_v1, %v982_v36  ;;  %v984_v45 = vsel %vm250_vm14, %v982_v36, %v980_v1  ;;  %vm1019_vm14 = vcmp.lt.s32.totalorder %v2164_v30, 122 }
 0x958   :  { %v985_v11 = vmax.f32 %v977_v7, %v983_v54  ;;  %v986_v49 = vmax.f32 %v978_v8, %v984_v45 }
 0x95a   :  { %v2616_v12 = vmul.f32 %v2607_v35, %v985_v11  ;;  %v2619_v23 = vmul.f32 %v2609_v40, %v986_v49 }
 0x95c   :  { %v1803_v19 = vpack.i.bf16 %v2619_v23, %v2616_v12  ;;  %v1155_v62 = vmul.f32 %v2616_v12, %v2607_v35  ;;  %v1156_v3 = vmul.f32 %v2619_v23, %v2609_v40 }
 0x95e   :  { %1804 = vrot.lane.b32.xlu1 %v1803_v19, %s2065_s23  ;;  %1799 = vrot.lane.b32.xlu0 %v1803_v19, %s2066_s24  ;;  %v1161_v4 = vadd.f32 %v1156_v3, %v1155_v62 }
 0x95f   :  { %1794 = vrot.lane.b32.xlu2 %v1803_v19, %s2067_s25 }
 0x967   :  { %1809 = vrot.lane.b32.xlu2 %v1803_v19, %s2068_s5 }
 0x9b9   :  { %v1795_v28 = vpop.permute.xlu2 %1794 }
 0x9ba   :  { %v1797_v24 = vunpack.i.h.bf16 %v1795_v28  ;;  %v1796_v33 = vunpack.i.l.bf16 %v1795_v28 }
 0x9bc   :  { %v1020_v26 = vsel %vm1019_vm14, %v1796_v33, %v1797_v24  ;;  %v1021_v13 = vsel %vm1019_vm14, %v1797_v24, %v1796_v33 }
 0x9bd   :  { %v1028_v10 = vpack.c.bf16 %v1020_v26, %v1020_v26  ;;  %v1029_v20 = vpack.c.bf16 %v1021_v13, %v1021_v13 }
 0x9bf   :  { %v1040_v14 = vsel %vm163_vm6, %v1028_v10, 0  ;;  %v1043_v55 = vsel %vm163_vm6, %v1029_v20, 0 }
 0x9c0   :  { %1050 = vmatpush.bf16.msrb.mxu2 %v1040_v14  ;;  %1064 = vmatpush.bf16.msrb.mxu3 %v1043_v55 }
 0x9c1   :  { %v1810_v15 = vpop.permute.xlu2 %1809 }
 0x9c2   :  { %v1812_v22 = vunpack.i.h.bf16 %v1810_v15  ;;  %v1811_v25 = vunpack.i.l.bf16 %v1810_v15 }
 0x9c4   :  { %v1007_v38 = vsel %vm1005_vm3, %v1812_v22, %v1811_v25  ;;  %v1006_v39 = vsel %vm1005_vm3, %v1811_v25, %v1812_v22 }
 0x9d0   :  { %v1805_v18 = vpop.permute.xlu1 %1804  ;;  %v1800_v21 = vpop.permute.xlu0 %1799 }
 0x9d1   :  { %v1807_v61 = vunpack.i.h.bf16 %v1805_v18  ;;  %v1806_v6 = vunpack.i.l.bf16 %v1805_v18  ;;  %v1802_v51 = vunpack.i.h.bf16 %v1800_v21  ;;  %v1801_v0 = vunpack.i.l.bf16 %v1800_v21 }
 0x9d3   :  { %v1013_v34 = vsel %vm1012_vm15, %v1801_v0, %v1802_v51  ;;  %v1014_v59 = vsel %vm1012_vm15, %v1802_v51, %v1801_v0  ;;  %v1000_v46 = vsel %vm998_vm2, %v1807_v61, %v1806_v6  ;;  %v999_v50 = vsel %vm998_vm2, %v1806_v6, %v1807_v61 }
 0x9d4   :  { %v1026_v37 = vpack.c.bf16 %v1013_v34, %v2616_v12  ;;  %v1027_v17 = vpack.c.bf16 %v1014_v59, %v2619_v23  ;;  %v1024_v5 = vpack.c.bf16 %v1007_v38, %v1000_v46  ;;  %v1025_v31 = vpack.c.bf16 %v1006_v39, %v999_v50 }
 0x9d6   :  { %1051 = vmatpush.bf16.msrb.mxu2 %v1026_v37  ;;  %1065 = vmatpush.bf16.msrb.mxu3 %v1027_v17 }
 0x9da   :  { %1052 = vmatpush.bf16.msrb.mxu2 %v1024_v5  ;;  %1066 = vmatpush.bf16.msrb.mxu3 %v1025_v31 }
 0x9dd   :  { %1742 = vmatmul.msk.bf16.vlgmr.msrb.gmra.mxu2 %vm1035_vm4, %v1768_v16  ;;  %1743 = vmatmul.msk.bf16.vlgmr.msrb.gmra.mxu3 %vm1035_vm4, %v1768_v16 }
 0xa60   :  { %v1054_v9 = vpop.f32.mrf.mxu2  ;;  %v1068_v32 = vpop.f32.mrf.mxu3 }
 0xa61   :  { %v1073_v41 = vmul.f32 %v1054_v9, %v2607_v35  ;;  %v1074_v53 = vmul.f32 %v1068_v32, %v2609_v40 }
 0xa63   :  { %v1077_v2 = vadd.f32 %v1074_v53, %v1073_v41 }
 0xa65   :  { %1078 = vadd.xlane.f32.xlu1 %v1077_v2 }
 0xa68   :  { %v1056_v42 = vpop.f32.mrf.mxu2  ;;  %v1070_v63 = vpop.f32.mrf.mxu3 }
 0xa69   :  { %v1075_v47 = vmul.f32 %v1056_v42, %v2607_v35  ;;  %v1076_v57 = vmul.f32 %v1070_v63, %v2609_v40 }
 0xa6b   :  { %v1080_v43 = vadd.f32 %v1076_v57, %v1075_v47 }
 0xa6d   :  { %1162 = vadd.xlane.f32.xlu1 %v1161_v4  ;;  %1081 = vadd.xlane.f32.xlu0 %v1080_v43 }
 0xad8   :  { %v1079_v29 = vpop.xlane.xlu1 %1078 }
 0xad9   :  { %v1083_v58 = vmul.f32 0.033333335, %v1079_v29 }
 0xadb   :  { %v1085_v48 = vsub.f32 %v1054_v9, %v1083_v58  ;;  %v1086_v44 = vsub.f32 %v1068_v32, %v1083_v58 }
 0xadd   :  { %v1089_v52 = vmul.f32 %v1085_v48, %v2607_v35  ;;  %v1090_v56 = vmul.f32 %v1086_v44, %v2609_v40 }
 0xadf   :  { %v1093_v27 = vmul.f32 %v1089_v52, %v1085_v48  ;;  %v1094_v60 = vmul.f32 %v1090_v56, %v1086_v44 }
 0xae0   :  { %v1163_v1 = vpop.xlane.xlu1 %1162  ;;  %v1082_v7 = vpop.xlane.xlu0 %1081 }
 0xae1   :  { %v1170_v8 = vmul.f32 0.033333335, %v1163_v1  ;;  %v1084_v36 = vmul.f32 0.033333335, %v1082_v7  ;;  %v1097_v54 = vadd.f32 %v1094_v60, %v1093_v27 }
 0xae3   :  { %v2655_v45 = vsub.f32 %v2616_v12, %v1170_v8  ;;  %v2658_v11 = vsub.f32 %v2619_v23, %v1170_v8  ;;  %v1087_v49 = vsub.f32 %v1056_v42, %v1084_v36  ;;  %v1088_v19 = vsub.f32 %v1070_v63, %v1084_v36  ;;  %1098 = vadd.xlane.f32.xlu0 %v1097_v54 }
 0xae5   :  { %v1179_v28 = vmul.f32 %v2655_v45, %v2607_v35  ;;  %v1180_v24 = vmul.f32 %v2658_v11, %v2609_v40  ;;  %v1091_v33 = vmul.f32 %v1087_v49, %v2607_v35  ;;  %v1092_v26 = vmul.f32 %v1088_v19, %v2609_v40 }
 0xae7   :  { %v1185_v13 = vmul.f32 %v1179_v28, %v2655_v45  ;;  %v1186_v12 = vmul.f32 %v1180_v24, %v2658_v11  ;;  %v1095_v10 = vmul.f32 %v1091_v33, %v1087_v49  ;;  %v1096_v23 = vmul.f32 %v1092_v26, %v1088_v19 }
 0xae9   :  { %v1191_v20 = vadd.f32 %v1186_v12, %v1185_v13  ;;  %v1100_v14 = vadd.f32 %v1096_v23, %v1095_v10 }
 0xaeb   :  { %1192 = vadd.xlane.f32.xlu1 %v1191_v20  ;;  %1101 = vadd.xlane.f32.xlu2 %v1100_v14 }
 0xb56   :  { %v1099_v55 = vpop.xlane.xlu0 %1098 }
 0xb57   :  { %v1103_v15 = vmul.f32 0.033333335, %v1099_v55 }
 0xb59   :  { %v1105_v18 = vadd.f32 1e-05, %v1103_v15 }
 0xb5b   :  { %1972 = vrsqrt.f32 %v1105_v18  ;;  %vm1113_vm7 = vweird.f32 %v1105_v18 }
 0xb5e   :  { %v1102_v21 = vpop.xlane.xlu2 %1101 }
 0xb5f   :  { %v1104_v61 = vmul.f32 0.033333335, %v1102_v21 }
 0xb61   :  { %v1973_v6 = vpop.eup %1972  ;;  %v1106_v51 = vadd.f32 1e-05, %v1104_v61 }
 0xb62   :  { %v1108_v0 = vmul.f32 %v1973_v6, %v1105_v18  ;;  %vm1114_vm5 = vweird.f32 %v1973_v6 }
 0xb63   :  { %1974 = vrsqrt.f32 %v1106_v51  ;;  %vm1115_vm8 = vmor %vm1113_vm7, %vm1114_vm5  ;;  %vm1123_vm1 = vweird.f32 %v1106_v51 }
 0xb64   :  { %v1109_v22 = vmul.f32 %v1973_v6, %v1108_v0 }
 0xb66   :  { %v1110_v25 = vmul.f32 0.5, %v1109_v22 }
 0xb68   :  { %v1111_v34 = vsub.f32 1.5, %v1110_v25  ;;  %v1193_v25 = vpop.xlane.xlu1 %1192 }
 0xb69   :  { %v1975_v59 = vpop.eup %1974 }
 0xb6a   :  { %v1112_v37 = vmul.f32 %v1973_v6, %v1111_v34  ;;  %v1118_v17 = vmul.f32 %v1975_v59, %v1106_v51  ;;  %vm1124_vm9 = vweird.f32 %v1975_v59  ;;  %v1200_v34 = vmul.f32 0.033333335, %v1193_v25 }
 0xb6b   :  { %vm1125_vm10 = vmor %vm1123_vm1, %vm1124_vm9 }
 0xb6c   :  { %v1116_v46 = vsel %vm1115_vm8, %v1973_v6, %v1112_v37  ;;  %v1119_v50 = vmul.f32 %v1975_v59, %v1118_v17 }
 0xb6d   :  { %v1127_v38 = vmul.f32 %v1116_v46, %v1085_v48  ;;  %v1128_v39 = vmul.f32 %v1116_v46, %v1086_v44 }
 0xb6e   :  { %v1120_v5 = vmul.f32 0.5, %v1119_v50 }
 0xb6f   :  { %v1135_v31 = vmin.f32 %v1127_v38, 0.0  ;;  %v1136_v16 = vmin.f32 %v1128_v39, 0.0  ;;  %vm1131_vm11 = vcmp.gt.f32.partialorder %v1127_v38, 0.0  ;;  %vm1132_vm12 = vcmp.gt.f32.partialorder %v1128_v39, 0.0 }
 0xb70   :  { %v1121_v9 = vsub.f32 1.5, %v1120_v5 }
 0xb71   :  { %v1139_v32 = vmul.f32 1.442695, %v1135_v31  ;;  %v1141_v41 = vmul.f32 1.442695, %v1136_v16 }
 0xb72   :  { %v1122_v53 = vmul.f32 %v1975_v59, %v1121_v9 }
 0xb73   :  { %1976 = vpow2.f32 %v1139_v32 }
 0xb74   :  { %1978 = vpow2.f32 %v1141_v41  ;;  %v1126_v2 = vsel %vm1125_vm10, %v1975_v59, %v1122_v53  ;;  %v1203_v59 = vadd.f32 1e-05, %v1200_v34 }
 0xb75   :  { %v1129_v62 = vmul.f32 %v1126_v2, %v1087_v49  ;;  %v1130_v3 = vmul.f32 %v1126_v2, %v1088_v19 }
 0xb76   :  { %vm1212_vm4 = vweird.f32 %v1203_v59 }
 0xb77   :  { %v1137_v42 = vmin.f32 %v1129_v62, 0.0  ;;  %v1138_v63 = vmin.f32 %v1130_v3, 0.0  ;;  %vm1133_vm13 = vcmp.gt.f32.partialorder %v1129_v62, 0.0  ;;  %vm1134_vm2 = vcmp.gt.f32.partialorder %v1130_v3, 0.0 }
 0xb79   :  { %v1977_v47 = vpop.eup %1976  ;;  %v1143_v43 = vmul.f32 1.442695, %v1137_v42  ;;  %v1145_v29 = vmul.f32 1.442695, %v1138_v63 }
 0xb7a   :  { %v1979_v57 = vpop.eup %1978  ;;  %v1744_v4 = vadd.f32 -1.0, %v1977_v47 }
 0xb7b   :  { %v1745_v58 = vadd.f32 -1.0, %v1979_v57  ;;  %1980 = vpow2.f32 %v1143_v43 }
 0xb7c   :  { %v1151_v48 = vsel %vm1131_vm11, %v1127_v38, %v1744_v4  ;;  %1982 = vpow2.f32 %v1145_v29 }
 0xb7d   :  { %v1152_v44 = vsel %vm1132_vm12, %v1128_v39, %v1745_v58  ;;  %v1157_v52 = vmul.f32 %v1151_v48, %v2607_v35  ;;  %1984 = vrsqrt.f32 %v1203_v59  ;;  %vm1367_vm12 = vcmask 588800  }
 0xb7e   :  { %v1158_v56 = vmul.f32 %v1152_v44, %v2609_v40 }
 0xb80   :  { %v1164_v27 = vadd.f32 %v1158_v56, %v1157_v52 }
 0xb81   :  { %v1981_v60 = vpop.eup %1980 }
 0xb82   :  { %1165 = vadd.xlane.f32.xlu0 %v1164_v27  ;;  %v1983_v1 = vpop.eup %1982  ;;  %v1746_v7 = vadd.f32 -1.0, %v1981_v60 }
 0xb83   :  { %v1747_v8 = vadd.f32 -1.0, %v1983_v1  ;;  %v1985_v37 = vpop.eup %1984 }
 0xb84   :  { %v1153_v36 = vsel %vm1133_vm13, %v1129_v62, %v1746_v7  ;;  %v1207_v17 = vmul.f32 %v1985_v37, %v1203_v59  ;;  %vm1213_vm3 = vweird.f32 %v1985_v37 }
 0xb85   :  { %v1154_v54 = vsel %vm1134_vm2, %v1130_v3, %v1747_v8  ;;  %v1159_v49 = vmul.f32 %v1153_v36, %v2607_v35  ;;  %vm1214_vm7 = vmor %vm1212_vm4, %vm1213_vm3 }
 0xb86   :  { %v1160_v19 = vmul.f32 %v1154_v54, %v2609_v40  ;;  %v1208_v39 = vmul.f32 %v1985_v37, %v1207_v17 }
 0xb88   :  { %v1167_v28 = vadd.f32 %v1160_v19, %v1159_v49  ;;  %v1209_v5 = vmul.f32 0.5, %v1208_v39 }
 0xb8a   :  { %1168 = vadd.xlane.f32.xlu2 %v1167_v28 }
 0xbf5   :  { %v1166_v24 = vpop.xlane.xlu0 %1165 }
 0xbf6   :  { %v1171_v33 = vmul.f32 0.033333335, %v1166_v24 }
 0xbf8   :  { %v1175_v26 = vsub.f32 %v1151_v48, %v1171_v33  ;;  %v1176_v13 = vsub.f32 %v1152_v44, %v1171_v33 }
 0xbfa   :  { %v1181_v12 = vmul.f32 %v1175_v26, %v2607_v35  ;;  %v1182_v10 = vmul.f32 %v1176_v13, %v2609_v40 }
 0xbfc   :  { %v1187_v23 = vmul.f32 %v1181_v12, %v1175_v26  ;;  %v1188_v20 = vmul.f32 %v1182_v10, %v1176_v13 }
 0xbfd   :  { %v1169_v14 = vpop.xlane.xlu2 %1168 }
 0xbfe   :  { %v1194_v55 = vadd.f32 %v1188_v20, %v1187_v23  ;;  %v1172_v15 = vmul.f32 0.033333335, %v1169_v14 }
 0xc00   :  { %1195 = vadd.xlane.f32.xlu0 %v1194_v55  ;;  %v1177_v18 = vsub.f32 %v1153_v36, %v1172_v15  ;;  %v1178_v21 = vsub.f32 %v1154_v54, %v1172_v15 }
 0xc02   :  { %v1183_v61 = vmul.f32 %v1177_v18, %v2607_v35  ;;  %v1184_v6 = vmul.f32 %v1178_v21, %v2609_v40  ;;  %v1210_v40 = vsub.f32 1.5, %v1209_v5 }
 0xc04   :  { %v1189_v51 = vmul.f32 %v1183_v61, %v1177_v18  ;;  %v1190_v0 = vmul.f32 %v1184_v6, %v1178_v21  ;;  %v1211_v53 = vmul.f32 %v1985_v37, %v1210_v40 }
 0xc06   :  { %v1197_v22 = vadd.f32 %v1190_v0, %v1189_v51  ;;  %v1215_v42 = vsel %vm1214_vm7, %v1985_v37, %v1211_v53 }
 0xc07   :  { %v2677_v43 = vmul.f32 %v1215_v42, %v2655_v45  ;;  %v1237_v60 = vmul.f32 %v1215_v42, %v2658_v11 }
 0xc08   :  { %1198 = vadd.xlane.f32.xlu2 %v1197_v22 }
 0xc73   :  { %v1196_v46 = vpop.xlane.xlu0 %1195 }
 0xc74   :  { %v1201_v50 = vmul.f32 0.033333335, %v1196_v46 }
 0xc76   :  { %v1204_v38 = vadd.f32 1e-05, %v1201_v50 }
 0xc78   :  { %1986 = vrsqrt.f32 %v1204_v38  ;;  %vm1222_vm8 = vweird.f32 %v1204_v38 }
 0xc7b   :  { %v1199_v31 = vpop.xlane.xlu2 %1198 }
 0xc7c   :  { %v1202_v35 = vmul.f32 0.033333335, %v1199_v31 }
 0xc7e   :  { %v1987_v16 = vpop.eup %1986  ;;  %v1205_v32 = vadd.f32 1e-05, %v1202_v35 }
 0xc7f   :  { %v1217_v9 = vmul.f32 %v1987_v16, %v1204_v38  ;;  %vm1223_vm5 = vweird.f32 %v1987_v16 }
 0xc80   :  { %1988 = vrsqrt.f32 %v1205_v32  ;;  %vm1224_vm9 = vmor %vm1222_vm8, %vm1223_vm5  ;;  %vm1232_vm10 = vweird.f32 %v1205_v32 }
 0xc81   :  { %v1218_v41 = vmul.f32 %v1987_v16, %v1217_v9 }
 0xc83   :  { %v1219_v2 = vmul.f32 0.5, %v1218_v41 }
 0xc85   :  { %v1220_v62 = vsub.f32 1.5, %v1219_v2 }
 0xc86   :  { %v1989_v3 = vpop.eup %1988 }
 0xc87   :  { %v1221_v63 = vmul.f32 %v1987_v16, %v1220_v62  ;;  %v1227_v47 = vmul.f32 %v1989_v3, %v1205_v32  ;;  %vm1233_vm1 = vweird.f32 %v1989_v3 }
 0xc88   :  { %vm1234_vm11 = vmor %vm1232_vm10, %vm1233_vm1 }
 0xc89   :  { %v1225_v57 = vsel %vm1224_vm9, %v1987_v16, %v1221_v63  ;;  %v1228_v4 = vmul.f32 %v1989_v3, %v1227_v47 }
 0xc8a   :  { %v2679_v29 = vmul.f32 %v1225_v57, %v1175_v26  ;;  %v1239_v56 = vmul.f32 %v1225_v57, %v1176_v13 }
 0xc8b   :  { %v1229_v58 = vmul.f32 0.5, %v1228_v4 }
 0xc8c   :  { %v1813_v48 = vpack.i.bf16 %v2679_v29, %v2677_v43  ;;  %v1818_v7 = vpack.i.bf16 %v1239_v56, %v1237_v60 }
 0xc8d   :  { %v1230_v44 = vsub.f32 1.5, %v1229_v58 }
 0xc8e   :  { %1814 = vrot.lane.b32.xlu0 %v1813_v48, %s2066_s24 }
 0xc8f   :  { %v1231_v52 = vmul.f32 %v1989_v3, %v1230_v44 }
 0xc91   :  { %v1235_v27 = vsel %vm1234_vm11, %v1989_v3, %v1231_v52 }
 0xc92   :  { %v1240_v1 = vmul.f32 %v1235_v27, %v1177_v18  ;;  %v1241_v45 = vmul.f32 %v1235_v27, %v1178_v21 }
 0xc94   :  { %v1833_v8 = vpack.i.bf16 %v1241_v45, %v1240_v1 }
 0xc96   :  { %1819 = vrot.lane.b32.xlu0 %v1818_v7, %s2066_s24  ;;  %1834 = vrot.lane.b32.xlu1 %v1833_v8, %s2067_s25 }
 0xc97   :  { %1824 = vrot.lane.b32.xlu2 %v1833_v8, %s2066_s24 }
 0xc9e   :  { %1839 = vrot.lane.b32.xlu1 %v1818_v7, %s2067_s25 }
 0xc9f   :  { %1829 = vrot.lane.b32.xlu2 %v1813_v48, %s2067_s25 }
 0xcf1   :  { %v1825_v54 = vpop.permute.xlu2 %1824 }
 0xcf2   :  { %v1827_v49 = vunpack.i.h.bf16 %v1825_v54  ;;  %v1826_v19 = vunpack.i.l.bf16 %v1825_v54 }
 0xcf4   :  { %v1256_v11 = vsel %vm1012_vm15, %v1826_v19, %v1827_v49  ;;  %v1259_v28 = vsel %vm1012_vm15, %v1827_v49, %v1826_v19 }
 0xcf5   :  { %v1264_v12 = vmax.f32 %v1240_v1, %v1256_v11  ;;  %v1265_v10 = vmax.f32 %v1241_v45, %v1259_v28 }
 0xcf9   :  { %v1830_v6 = vpop.permute.xlu2 %1829 }
 0xcfa   :  { %v1832_v37 = vunpack.i.h.bf16 %v1830_v6  ;;  %v1831_v17 = vunpack.i.l.bf16 %v1830_v6  ;;  %v1342_v6 = vld [vmem:[%s2863_s9 + $0x8] sm:$0xff] }
 0xd00   :  { %v1815_v36 = vpop.permute.xlu0 %1814 }
 0xd01   :  { %v1817_v21 = vunpack.i.h.bf16 %v1815_v36  ;;  %v1816_v61 = vunpack.i.l.bf16 %v1815_v36 }
 0xd08   :  { %v1835_v24 = vpop.permute.xlu1 %1834  ;;  %v1820_v33 = vpop.permute.xlu0 %1819 }
 0xd09   :  { %v1837_v26 = vunpack.i.h.bf16 %v1835_v24  ;;  %v1836_v13 = vunpack.i.l.bf16 %v1835_v24  ;;  %v1822_v14 = vunpack.i.h.bf16 %v1820_v33  ;;  %v1821_v55 = vunpack.i.l.bf16 %v1820_v33 }
 0xd0b   :  { %v1280_v23 = vsel %vm1019_vm14, %v1836_v13, %v1837_v26  ;;  %v1283_v20 = vsel %vm1019_vm14, %v1837_v26, %v1836_v13  ;;  %v1254_v0 = vsel %vm1012_vm15, %v1816_v61, %v1821_v55  ;;  %v1255_v22 = vsel %vm1012_vm15, %v1817_v21, %v1822_v14 }
 0xd0c   :  { %v2698_v15 = vmax.f32 %v1264_v12, %v1280_v23  ;;  %v2700_v18 = vmax.f32 %v1265_v10, %v1283_v20  ;;  %v1257_v25 = vsel %vm1012_vm15, %v1821_v55, %v1816_v61  ;;  %v1258_v34 = vsel %vm1012_vm15, %v1822_v14, %v1817_v21 }
 0xd0d   :  { %v1260_v38 = vmax.f32 %v2677_v43, %v1254_v0  ;;  %v1261_v39 = vmax.f32 %v1237_v60, %v1257_v25  ;;  %v1262_v5 = vmax.f32 %v2679_v29, %v1255_v22  ;;  %v1263_v31 = vmax.f32 %v1239_v56, %v1258_v34 }
 0xd0e   :  { %v1843_v51 = vpack.i.bf16 %v2700_v18, %v2698_v15  ;;  %vm1302_vm15 = vcmp.lt.s32.totalorder %v2164_v30, 119  ;;  %v2071_v0 = vmov 0  }
 0xd0f   :  { %1875 = vset.pattern.permute.xlu1 %v2071_v0  ;;  %1873 = vset.pattern.permute.xlu0 %v2071_v0 }
 0xd10   :  { %v1840_v59 = vpop.permute.xlu1 %1839  ;;  %1844 = vrot.lane.b32.xlu0 %v1843_v51, %s2069_s7  ;;  %v1343_v51 = vld [vmem:[%s2863_s9 + $0x10] sm:$0xff]  ;;  %1874 = vset.pattern.permute.xlu2 %v2071_v0 }
 0xd11   :  { %v1842_v46 = vunpack.i.h.bf16 %v1840_v59  ;;  %v1841_v50 = vunpack.i.l.bf16 %v1840_v59  ;;  %v1341_v59 = vld [vmem:[%s2863_s9] sm:$0xff] }
 0xd13   :  { %v1278_v35 = vsel %vm1019_vm14, %v1831_v17, %v1841_v50  ;;  %v1279_v16 = vsel %vm1019_vm14, %v1832_v37, %v1842_v46  ;;  %v1281_v40 = vsel %vm1019_vm14, %v1841_v50, %v1831_v17  ;;  %v1282_v9 = vsel %vm1019_vm14, %v1842_v46, %v1832_v37 }
 0xd14   :  { %v2723_v32 = vmax.f32 %v1260_v38, %v1278_v35  ;;  %v2725_v41 = vmax.f32 %v1261_v39, %v1281_v40  ;;  %v2727_v53 = vmax.f32 %v1262_v5, %v1279_v16  ;;  %v2729_v2 = vmax.f32 %v1263_v31, %v1282_v9  ;;  %v1769_v5 = vld [vmem:[%s2862_s8] sm:$0xff] }
 0xd15   :  { %vm1321_vm14 = vcmp.lt.s32.totalorder %v2164_v30, 110  ;;  %v1653_v35 = vld [vmem:[%s2855_s1 + $0x3] ss:$8 sm:$0x3] }
 0xd16   :  { %v1858_v62 = vpack.i.bf16 %v2698_v15, %v2727_v53  ;;  %v1853_v3 = vpack.i.bf16 %v2729_v2, %v2725_v41  ;;  %v1848_v42 = vpack.i.bf16 %v2727_v53, %v2723_v32  ;;  %v1331_v63 = vpack.c.bf16 %v2727_v53, %v2723_v32 }
 0xd17   :  { %v1332_v47 = vpack.c.bf16 %v2729_v2, %v2725_v41  ;;  %v1868_v57 = vpack.i.bf16 %v2725_v41, %v2723_v32  ;;  %v1863_v4 = vpack.i.bf16 %v2700_v18, %v2729_v2  ;;  %v1417_v40 = vperm.slane %v1653_v35, 0 }
 0xd18   :  { %1859 = vrot.lane.b32.xlu0 %v1858_v62, %s2070_s28  ;;  %1854 = vrot.lane.b32.xlu1 %v1853_v3, %s2069_s7  ;;  %v1418_v9 = vperm.slane %v1653_v35, 1 }
 0xd19   :  { %1849 = vrot.lane.b32.xlu2 %v1848_v42, %s2069_s7 }
 0xd20   :  { %1869 = vrot.lane.b32.xlu1 %v1868_v57, %s2070_s28  ;;  %1356 = vperm.xlu0 %1873, %v1343_v51  }
 0xd21   :  { %1864 = vrot.lane.b32.xlu2 %v1863_v4, %s2070_s28 }
 0xd28   :  { %1351 = vperm.xlu1 %1875, %v1342_v6  }
 0xd29   :  { %1346 = vperm.xlu2 %1874, %v1341_v59  }
 0xd73   :  { %v1850_v43 = vpop.permute.xlu2 %1849 }
 0xd74   :  { %v1852_v7 = vunpack.i.h.bf16 %v1850_v43  ;;  %v1851_v8 = vunpack.i.l.bf16 %v1850_v43 }
 0xd7b   :  { %v1865_v45 = vpop.permute.xlu2 %1864 }
 0xd7c   :  { %v1867_v24 = vunpack.i.h.bf16 %v1865_v45  ;;  %v1866_v33 = vunpack.i.l.bf16 %v1865_v45 }
 0xd82   :  { %v1845_v29 = vpop.permute.xlu0 %1844 }
 0xd83   :  { %v1847_v58 = vunpack.i.h.bf16 %v1845_v29  ;;  %v1846_v48 = vunpack.i.l.bf16 %v1845_v29  ;;  %v1347_v16 = vpop.permute.xlu2 %1346 }
 0xd85   :  { %v1324_v44 = vsel %vm1321_vm14, %v1846_v48, %v1847_v58  ;;  %v1327_v52 = vsel %vm1321_vm14, %v1847_v58, %v1846_v48 }
 0xd86   :  { %v1339_v56 = vpack.c.bf16 %v1324_v44, %v1324_v44  ;;  %v1340_v27 = vpack.c.bf16 %v1327_v52, %v1327_v52 }
 0xd88   :  { %v1375_v60 = vsel %vm163_vm6, %v1339_v56, 0  ;;  %v1378_v1 = vsel %vm163_vm6, %v1340_v27, 0 }
 0xd89   :  { %1383 = vmatpush.bf16.msra.mxu2 %v1375_v60  ;;  %1401 = vmatpush.bf16.msra.mxu3 %v1378_v1 }
 0xd8a   :  { %v1860_v36 = vpop.permute.xlu0 %1859  ;;  %v1855_v54 = vpop.permute.xlu1 %1854 }
 0xd8b   :  { %v1862_v49 = vunpack.i.h.bf16 %v1860_v36  ;;  %v1861_v19 = vunpack.i.l.bf16 %v1860_v36  ;;  %v1857_v11 = vunpack.i.h.bf16 %v1855_v54  ;;  %v1856_v28 = vunpack.i.l.bf16 %v1855_v54 }
 0xd8d   :  { %v1322_v26 = vsel %vm1321_vm14, %v1851_v8, %v1856_v28  ;;  %v1323_v13 = vsel %vm1321_vm14, %v1852_v7, %v1857_v11  ;;  %v1325_v12 = vsel %vm1321_vm14, %v1856_v28, %v1851_v8  ;;  %v1326_v10 = vsel %vm1321_vm14, %v1857_v11, %v1852_v7 }
 0xd8e   :  { %v1337_v23 = vpack.c.bf16 %v1323_v13, %v1322_v26  ;;  %v1338_v20 = vpack.c.bf16 %v1326_v10, %v1325_v12  ;;  %v1304_v14 = vsel %vm1302_vm15, %v1861_v19, %v1866_v33  ;;  %v1305_v55 = vsel %vm1302_vm15, %v1862_v49, %v1867_v24 }
 0xd8f   :  { %v1307_v21 = vsel %vm1302_vm15, %v1866_v33, %v1861_v19  ;;  %v1308_v61 = vsel %vm1302_vm15, %v1867_v24, %v1862_v49  ;;  %v1335_v25 = vpack.c.bf16 %v1305_v55, %v1304_v14 }
 0xd90   :  { %1384 = vmatpush.bf16.msra.mxu2 %v1337_v23  ;;  %1402 = vmatpush.bf16.msra.mxu3 %v1338_v20  ;;  %v1336_v34 = vpack.c.bf16 %v1308_v61, %v1307_v21 }
 0xd92   :  { %v1870_v22 = vpop.permute.xlu1 %1869  ;;  %v1357_v44 = vpop.permute.xlu0 %1356 }
 0xd93   :  { %v1872_v37 = vunpack.i.h.bf16 %v1870_v22  ;;  %v1871_v17 = vunpack.i.l.bf16 %v1870_v22 }
 0xd94   :  { %1385 = vmatpush.bf16.msra.mxu2 %v1335_v25  ;;  %1403 = vmatpush.bf16.msra.mxu3 %v1336_v34 }
 0xd95   :  { %v1303_v46 = vsel %vm1302_vm15, %v1871_v17, %v1872_v37  ;;  %v1306_v50 = vsel %vm1302_vm15, %v1872_v37, %v1871_v17 }
 0xd96   :  { %v1333_v38 = vpack.c.bf16 %v1303_v46, %v2698_v15  ;;  %v1334_v39 = vpack.c.bf16 %v1306_v50, %v2700_v18  ;;  %v1330_v15 = vld [vmem:[%s2862_s8 + $0x8] sm:$0xf] }
 0xd97   :  { %v1364_v18 = vunpack.c.l.b16 %v1330_v15 }
 0xd98   :  { %1386 = vmatpush.bf16.msra.mxu2 %v1333_v38  ;;  %1404 = vmatpush.bf16.msra.mxu3 %v1334_v39 }
 0xd99   :  { %v1366_v31 = vpack.c.b16 %v1364_v18, %v1364_v18 }
 0xd9c   :  { %1387 = vmatpush.bf16.msra.mxu2 %v1331_v63  ;;  %1405 = vmatpush.bf16.msra.mxu3 %v1332_v47  ;;  %v1352_v63 = vpop.permute.xlu1 %1351 }
 0xd9f   :  { %1752 = vmatmul.msk.bf16.vlgmr.msra.gmra.mxu2 %vm1367_vm12, %v1769_v5  ;;  %1754 = vmatmul.msk.bf16.vlgmr.msra.gmra.mxu3 %vm1367_vm12, %v1769_v5 }
 0xdaf   :  { %1753 = vmatmul.msk.bf16.gmra.mxu2 %vm1367_vm12, %v1366_v31  ;;  %1755 = vmatmul.msk.bf16.gmra.mxu3 %vm1367_vm12, %v1366_v31 }
 0xe22   :  { %v1389_v32 = vpop.f32.mrf.mxu2  ;;  %v1407_v41 = vpop.f32.mrf.mxu3 }
 0xe23   :  { %v1390_v53 = vadd.f32 %v1389_v32, %v1347_v16  ;;  %v1408_v2 = vadd.f32 %v1407_v41, %v1347_v16 }
 0xe25   :  { %v1421_v62 = vmul.f32 %v1417_v40, %v1390_v53  ;;  %v1422_v3 = vmul.f32 %v1418_v9, %v1408_v2 }
 0xe27   :  { %v1427_v42 = vadd.f32 %v1422_v3, %v1421_v62 }
 0xe29   :  { %1428 = vadd.xlane.f32.xlu1 %v1427_v42 }
 0xe2a   :  { %v1391_v47 = vpop.f32.mrf.mxu2  ;;  %v1409_v57 = vpop.f32.mrf.mxu3 }
 0xe2b   :  { %v1392_v4 = vadd.f32 %v1391_v47, %v1352_v63  ;;  %v1410_v43 = vadd.f32 %v1409_v57, %v1352_v63 }
 0xe2d   :  { %v1423_v29 = vmul.f32 %v1417_v40, %v1392_v4  ;;  %v1424_v58 = vmul.f32 %v1418_v9, %v1410_v43 }
 0xe2f   :  { %v1430_v48 = vadd.f32 %v1424_v58, %v1423_v29 }
 0xe31   :  { %1431 = vadd.xlane.f32.xlu0 %v1430_v48 }
 0xe32   :  { %v1394_v52 = vpop.f32.mrf.mxu2  ;;  %v1412_v56 = vpop.f32.mrf.mxu3 }
 0xe33   :  { %v1395_v27 = vadd.f32 %v1394_v52, %v1357_v44  ;;  %v1413_v60 = vadd.f32 %v1412_v56, %v1357_v44 }
 0xe35   :  { %v1425_v1 = vmul.f32 %v1417_v40, %v1395_v27  ;;  %v1426_v45 = vmul.f32 %v1418_v9, %v1413_v60 }
 0xe37   :  { %v1433_v7 = vadd.f32 %v1426_v45, %v1425_v1 }
 0xe39   :  { %1434 = vadd.xlane.f32.xlu2 %v1433_v7 }
 0xe3a   :  { %v1396_v8 = vpop.f32.mrf.mxu2  ;;  %v1414_v36 = vpop.f32.mrf.mxu3 }
 0xe9c   :  { %v1429_v54 = vpop.xlane.xlu1 %1428 }
 0xe9d   :  { %v1436_v49 = vmul.f32 0.16666667, %v1429_v54 }
 0xe9f   :  { %v1439_v19 = vsub.f32 %v1390_v53, %v1436_v49  ;;  %v1440_v11 = vsub.f32 %v1408_v2, %v1436_v49 }
 0xea1   :  { %v1445_v28 = vmul.f32 %v1439_v19, %v1417_v40  ;;  %v1446_v24 = vmul.f32 %v1440_v11, %v1418_v9 }
 0xea3   :  { %v1451_v33 = vmul.f32 %v1445_v28, %v1439_v19  ;;  %v1452_v26 = vmul.f32 %v1446_v24, %v1440_v11 }
 0xea4   :  { %v1432_v12 = vpop.xlane.xlu0 %1431 }
 0xea5   :  { %v1457_v13 = vadd.f32 %v1452_v26, %v1451_v33  ;;  %v1437_v23 = vmul.f32 0.16666667, %v1432_v12 }
 0xea7   :  { %1458 = vadd.xlane.f32.xlu1 %v1457_v13  ;;  %v2804_v21 = vsub.f32 %v1392_v4, %v1437_v23  ;;  %v2806_v61 = vsub.f32 %v1410_v43, %v1437_v23 }
 0xea9   :  { %v1447_v34 = vmul.f32 %v2804_v21, %v1417_v40  ;;  %v1448_v59 = vmul.f32 %v2806_v61, %v1418_v9 }
 0xeab   :  { %v1453_v37 = vmul.f32 %v1447_v34, %v2804_v21  ;;  %v1454_v17 = vmul.f32 %v1448_v59, %v2806_v61 }
 0xeac   :  { %v1435_v10 = vpop.xlane.xlu2 %1434 }
 0xead   :  { %v1438_v20 = vmul.f32 0.16666667, %v1435_v10  ;;  %v1460_v46 = vadd.f32 %v1454_v17, %v1453_v37 }
 0xeaf   :  { %v1443_v14 = vsub.f32 %v1395_v27, %v1438_v20  ;;  %v1444_v55 = vsub.f32 %v1413_v60, %v1438_v20 }
 0xeb1   :  { %v1449_v6 = vmul.f32 %v1443_v14, %v1417_v40  ;;  %v1450_v51 = vmul.f32 %v1444_v55, %v1418_v9 }
 0xeb3   :  { %v1455_v0 = vmul.f32 %v1449_v6, %v1443_v14  ;;  %v1456_v22 = vmul.f32 %v1450_v51, %v1444_v55 }
 0xeb5   :  { %v1463_v25 = vadd.f32 %v1456_v22, %v1455_v0 }
 0xeb7   :  { %1464 = vadd.xlane.f32.xlu2 %v1463_v25 }
 0xebf   :  { %1461 = vadd.xlane.f32.xlu2 %v1460_v46 }
 0xf1a   :  { %v1459_v50 = vpop.xlane.xlu1 %1458 }
 0xf1b   :  { %v1466_v38 = vmul.f32 0.16666667, %v1459_v50 }
 0xf1d   :  { %v1469_v39 = vadd.f32 1e-05, %v1466_v38 }
 0xf1f   :  { %1990 = vrsqrt.f32 %v1469_v39  ;;  %vm1478_vm2 = vweird.f32 %v1469_v39 }
 0xf25   :  { %v1991_v5 = vpop.eup %1990 }
 0xf26   :  { %v1473_v15 = vmul.f32 %v1991_v5, %v1469_v39  ;;  %vm1479_vm13 = vweird.f32 %v1991_v5 }
 0xf27   :  { %vm1480_vm3 = vmor %vm1478_vm2, %vm1479_vm13 }
 0xf28   :  { %v1474_v35 = vmul.f32 %v1991_v5, %v1473_v15 }
 0xf2a   :  { %v1465_v18 = vpop.xlane.xlu2 %1464  ;;  %v1475_v40 = vmul.f32 0.5, %v1474_v35 }
 0xf2b   :  { %v1468_v31 = vmul.f32 0.16666667, %v1465_v18 }
 0xf2c   :  { %v1476_v41 = vsub.f32 1.5, %v1475_v40 }
 0xf2d   :  { %v1471_v16 = vadd.f32 1e-05, %v1468_v31 }
 0xf2e   :  { %v1477_v3 = vmul.f32 %v1991_v5, %v1476_v41 }
 0xf2f   :  { %1992 = vrsqrt.f32 %v1471_v16  ;;  %vm1498_vm5 = vweird.f32 %v1471_v16 }
 0xf30   :  { %v1481_v47 = vsel %vm1480_vm3, %v1991_v5, %v1477_v3 }
 0xf31   :  { %v1503_v58 = vmul.f32 %v1481_v47, %v1440_v11  ;;  %v1502_v48 = vmul.f32 %v1481_v47, %v1439_v19 }
 0xf32   :  { %v1462_v9 = vpop.xlane.xlu2 %1461 }
 0xf33   :  { %v1467_v32 = vmul.f32 0.16666667, %v1462_v9  ;;  %v1515_v7 = vmin.f32 %v1503_v58, 0.0  ;;  %v1514_v36 = vmin.f32 %v1502_v48, 0.0  ;;  %vm1509_vm12 = vcmp.gt.f32.partialorder %v1503_v58, 0.0 }
 0xf34   :  { %vm1508_vm2 = vcmp.gt.f32.partialorder %v1502_v48, 0.0 }
 0xf35   :  { %v1993_v53 = vpop.eup %1992  ;;  %v1470_v2 = vadd.f32 1e-05, %v1467_v32  ;;  %v1522_v11 = vmul.f32 1.442695, %v1515_v7  ;;  %v1520_v19 = vmul.f32 1.442695, %v1514_v36 }
 0xf36   :  { %v1493_v62 = vmul.f32 %v1993_v53, %v1471_v16  ;;  %vm1499_vm4 = vweird.f32 %v1993_v53 }
 0xf37   :  { %1994 = vrsqrt.f32 %v1470_v2  ;;  %vm1500_vm7 = vmor %vm1498_vm5, %vm1499_vm4  ;;  %vm1488_vm9 = vweird.f32 %v1470_v2 }
 0xf38   :  { %v1494_v42 = vmul.f32 %v1993_v53, %v1493_v62 }
 0xf3a   :  { %v1495_v63 = vmul.f32 0.5, %v1494_v42 }
 0xf3c   :  { %v1496_v57 = vsub.f32 1.5, %v1495_v63 }
 0xf3d   :  { %v1995_v4 = vpop.eup %1994 }
 0xf3e   :  { %v1497_v43 = vmul.f32 %v1993_v53, %v1496_v57  ;;  %v1483_v29 = vmul.f32 %v1995_v4, %v1470_v2  ;;  %vm1489_vm8 = vweird.f32 %v1995_v4 }
 0xf3f   :  { %vm1490_vm1 = vmor %vm1488_vm9, %vm1489_vm8 }
 0xf40   :  { %v1501_v44 = vsel %vm1500_vm7, %v1993_v53, %v1497_v43  ;;  %v1484_v52 = vmul.f32 %v1995_v4, %v1483_v29 }
 0xf41   :  { %v1506_v56 = vmul.f32 %v1501_v44, %v1443_v14  ;;  %v1507_v27 = vmul.f32 %v1501_v44, %v1444_v55 }
 0xf42   :  { %v1485_v60 = vmul.f32 0.5, %v1484_v52 }
 0xf43   :  { %v1518_v1 = vmin.f32 %v1506_v56, 0.0  ;;  %v1519_v45 = vmin.f32 %v1507_v27, 0.0  ;;  %vm1512_vm10 = vcmp.gt.f32.partialorder %v1506_v56, 0.0  ;;  %vm1513_vm11 = vcmp.gt.f32.partialorder %v1507_v27, 0.0 }
 0xf44   :  { %v1486_v8 = vsub.f32 1.5, %v1485_v60 }
 0xf45   :  { %v1528_v54 = vmul.f32 1.442695, %v1518_v1  ;;  %v1530_v49 = vmul.f32 1.442695, %v1519_v45 }
 0xf46   :  { %v1487_v28 = vmul.f32 %v1995_v4, %v1486_v8 }
 0xf47   :  { %1996 = vpow2.f32 %v1528_v54 }
 0xf48   :  { %v1491_v24 = vsel %vm1490_vm1, %v1995_v4, %v1487_v28  ;;  %1998 = vpow2.f32 %v1530_v49 }
 0xf49   :  { %v1504_v33 = vmul.f32 %v1491_v24, %v2804_v21  ;;  %v1505_v26 = vmul.f32 %v1491_v24, %v2806_v61  ;;  %2000 = vpow2.f32 %v1522_v11 }
 0xf4a   :  { %2002 = vpow2.f32 %v1520_v19 }
 0xf4b   :  { %v1517_v13 = vmin.f32 %v1505_v26, 0.0  ;;  %v1516_v12 = vmin.f32 %v1504_v33, 0.0  ;;  %vm1511_vm13 = vcmp.gt.f32.partialorder %v1505_v26, 0.0  ;;  %vm1510_vm3 = vcmp.gt.f32.partialorder %v1504_v33, 0.0 }
 0xf4d   :  { %v1997_v10 = vpop.eup %1996  ;;  %v1526_v23 = vmul.f32 1.442695, %v1517_v13  ;;  %v1524_v20 = vmul.f32 1.442695, %v1516_v12 }
 0xf4e   :  { %v1999_v14 = vpop.eup %1998  ;;  %v1760_v55 = vadd.f32 -1.0, %v1997_v10 }
 0xf4f   :  { %v1761_v6 = vadd.f32 -1.0, %v1999_v14  ;;  %2004 = vpow2.f32 %v1526_v23  ;;  %v2001_v0 = vpop.eup %2000 }
 0xf50   :  { %v1542_v51 = vsel %vm1512_vm10, %v1506_v56, %v1760_v55  ;;  %2006 = vpow2.f32 %v1524_v20  ;;  %v2003_v21 = vpop.eup %2002  ;;  %v1757_v61 = vadd.f32 -1.0, %v2001_v0 }
 0xf51   :  { %v1543_v22 = vsel %vm1513_vm11, %v1507_v27, %v1761_v6  ;;  %v1756_v59 = vadd.f32 -1.0, %v2003_v21 }
 0xf52   :  { %v1891_v25 = vpack.i.bf16 %v1543_v22, %v1542_v51  ;;  %v1539_v50 = vsel %vm1509_vm12, %v1503_v58, %v1757_v61 }
 0xf53   :  { %v1538_v5 = vsel %vm1508_vm2, %v1502_v48, %v1756_v59 }
 0xf54   :  { %1892 = vrot.lane.b32.xlu1 %v1891_v25, %s2069_s7 }
 0xf55   :  { %v2005_v34 = vpop.eup %2004 }
 0xf56   :  { %v2007_v37 = vpop.eup %2006  ;;  %v1759_v17 = vadd.f32 -1.0, %v2005_v34 }
 0xf57   :  { %v1758_v46 = vadd.f32 -1.0, %v2007_v37 }
 0xf58   :  { %v1541_v38 = vsel %vm1511_vm13, %v1505_v26, %v1759_v17 }
 0xf59   :  { %v1881_v39 = vpack.i.bf16 %v1541_v38, %v1539_v50  ;;  %v1540_v15 = vsel %vm1510_vm3, %v1504_v33, %v1758_v46 }
 0xf5a   :  { %v1896_v18 = vpack.i.bf16 %v1540_v15, %v1538_v5 }
 0xf5b   :  { %1882 = vrot.lane.b32.xlu0 %v1881_v39, %s2070_s28 }
 0xf5c   :  { %1897 = vrot.lane.b32.xlu1 %v1896_v18, %s2069_s7  ;;  %1877 = vrot.lane.b32.xlu2 %v1896_v18, %s2070_s28 }
 0xf63   :  { %1887 = vrot.lane.b32.xlu0 %v1891_v25, %s2070_s28 }
 0xf6b   :  { %1902 = vrot.lane.b32.xlu0 %v1881_v39, %s2069_s7 }
 0xfb6   :  { %v1878_v40 = vpop.permute.xlu2 %1877 }
 0xfb7   :  { %v1879_v63 = vunpack.i.l.bf16 %v1878_v40  ;;  %v1880_v4 = vunpack.i.h.bf16 %v1878_v40 }
 0xfc6   :  { %v1893_v35 = vpop.permute.xlu1 %1892 }
 0xfc7   :  { %v1895_v9 = vunpack.i.h.bf16 %v1893_v35  ;;  %v1894_v32 = vunpack.i.l.bf16 %v1893_v35 }
 0xfc9   :  { %v1582_v43 = vsel %vm1321_vm14, %v1894_v32, %v1895_v9  ;;  %v1585_v29 = vsel %vm1321_vm14, %v1895_v9, %v1894_v32 }
 0xfcd   :  { %v1883_v31 = vpop.permute.xlu0 %1882 }
 0xfce   :  { %v1884_v2 = vunpack.i.l.bf16 %v1883_v31  ;;  %v1885_v62 = vunpack.i.h.bf16 %v1883_v31  ;;  %v1898_v58 = vpop.permute.xlu1 %1897 }
 0xfcf   :  { %v1900_v1 = vunpack.i.h.bf16 %v1898_v58  ;;  %v1899_v45 = vunpack.i.l.bf16 %v1898_v58 }
 0xfd0   :  { %v1556_v48 = vsel %vm1302_vm15, %v1879_v63, %v1884_v2  ;;  %v1559_v44 = vsel %vm1302_vm15, %v1884_v2, %v1879_v63  ;;  %v1557_v27 = vsel %vm1302_vm15, %v1880_v4, %v1885_v62  ;;  %v1560_v60 = vsel %vm1302_vm15, %v1885_v62, %v1880_v4 }
 0xfd1   :  { %v1562_v54 = vmax.f32 %v1538_v5, %v1556_v48  ;;  %v1563_v49 = vmax.f32 %v1539_v50, %v1559_v44  ;;  %v1564_v24 = vmax.f32 %v1540_v15, %v1557_v27  ;;  %v1565_v19 = vmax.f32 %v1541_v38, %v1560_v60 }
 0xfd5   :  { %v1888_v16 = vpop.permute.xlu0 %1887 }
 0xfd6   :  { %v1890_v41 = vunpack.i.h.bf16 %v1888_v16  ;;  %v1889_v53 = vunpack.i.l.bf16 %v1888_v16 }
 0xfd8   :  { %v1558_v3 = vsel %vm1302_vm15, %v1889_v53, %v1890_v41  ;;  %v1561_v42 = vsel %vm1302_vm15, %v1890_v41, %v1889_v53 }
 0xfd9   :  { %v1566_v47 = vmax.f32 %v1542_v51, %v1558_v3  ;;  %v1567_v57 = vmax.f32 %v1543_v22, %v1561_v42  ;;  %v1592_v22 = vld [vmem:[%s2864_s10] sm:$0xf] }
 0xfdb   :  { %v1590_v52 = vmax.f32 %v1566_v47, %v1582_v43  ;;  %v1591_v56 = vmax.f32 %v1567_v57, %v1585_v29 }
 0xfdd   :  { %v1903_v7 = vpop.permute.xlu0 %1902  ;;  %v1595_v8 = vpack.c.bf16 %v1590_v52, %v1590_v52  ;;  %v1596_v36 = vpack.c.bf16 %v1591_v56, %v1591_v56 }
 0xfde   :  { %v1905_v28 = vunpack.i.h.bf16 %v1903_v7  ;;  %v1904_v11 = vunpack.i.l.bf16 %v1903_v7 }
 0xfdf   :  { %v1601_v33 = vsel %vm163_vm6, %v1595_v8, 0  ;;  %v1604_v26 = vsel %vm163_vm6, %v1596_v36, 0 }
 0xfe0   :  { %v1580_v13 = vsel %vm1321_vm14, %v1899_v45, %v1904_v11  ;;  %v1581_v12 = vsel %vm1321_vm14, %v1900_v1, %v1905_v28  ;;  %v1583_v10 = vsel %vm1321_vm14, %v1904_v11, %v1899_v45  ;;  %v1584_v23 = vsel %vm1321_vm14, %v1905_v28, %v1900_v1  ;;  %1612 = vmatpush.bf16.msrb.mxu0 %v1601_v33 }
 0xfe1   :  { %1625 = vmatpush.bf16.msrb.mxu1 %v1604_v26  ;;  %v1586_v20 = vmax.f32 %v1562_v54, %v1580_v13  ;;  %v1588_v14 = vmax.f32 %v1564_v24, %v1581_v12  ;;  %v1587_v55 = vmax.f32 %v1563_v49, %v1583_v10  ;;  %v1589_v6 = vmax.f32 %v1565_v19, %v1584_v23 }
 0xfe3   :  { %v1593_v51 = vpack.c.bf16 %v1588_v14, %v1586_v20  ;;  %v1594_v0 = vpack.c.bf16 %v1589_v6, %v1587_v55 }
 0xfe5   :  { %1613 = vmatpush.bf16.msrb.mxu0 %v1593_v51  ;;  %1626 = vmatpush.bf16.msrb.mxu1 %v1594_v0 }
 0xfe8   :  { %1762 = vmatmul.msk.bf16.vlgmr.msrb.gmra.mxu0 %vm285_vm0, %v1592_v22  ;;  %1763 = vmatmul.msk.bf16.vlgmr.msrb.gmra.mxu1 %vm285_vm0, %v1592_v22 }
0x1065   :  { %v1615_v30 = vpop.f32.mrf.mxu0  ;;  %v1628_v21 = vpop.f32.mrf.mxu1 }
0x1066   :  { %1632 = vst [vmem:[#allocation5] sm:$0xff] %v1615_v30 }
0x1067   :  { %1633 = vst [vmem:[#allocation5 + $0x8] sm:$0xff] %v1628_v21 }
0x1068   :  { %1644 = dma.vmem_to_hbm [thread:$0]  %s1640_s4, 256, %s1642_s21, [#allocation4]  }
0x106d   :  { %v1617_v25 = vpop.f32.mrf.mxu0  ;;  %v1630_v61 = vpop.f32.mrf.mxu1 }
0x106e   :  { %2058 = dma.done.wait [#allocation4], 256  }
0x106f   :  { %2059 = vsyncadd [#allocation4], 4294967040 }
0x1070   :  { %1649 = vsyncpa [#allocation3], 1 }
0x1071   :  { %1650 = vsyncpa [#allocation4], 1 }

</bundles_post_ra>
